<compile_context>
chip_gen: v6e
topology: v6e:2x2x1
jax: 0.10.0
libtpu: 0.0.40
codegen_flags: <defaults>
</compile_context>

<pallas_src>
import functools

import jax
import jax.numpy as jnp
from jax.experimental import pallas as pl
from jax.experimental.pallas import tpu as pltpu


def _round_up(x, m):
    return (x + m - 1) // m * m


# ---------------------------------------------------------------------------
# Kernel: one batch tile of the whole MLP (weights resident in VMEM).
# ---------------------------------------------------------------------------
def actor_kernel(s_ref, a_ref,
                 ws_ref, wa_ref, b1_ref,
                 w11_ref, b11_ref,
                 w2_ref, b2_ref,
                 w3_ref, b3_ref,
                 out_ref, *, max_action, scale):
    bf16 = jnp.bfloat16
    act_f32 = a_ref[...]                                    # [TB, A_pad] f32 (residual)

    # l1 + relu : state @ Ws + action @ Wa + b1   (split concat, f32 accumulation)
    h = jnp.dot(s_ref[...].astype(bf16), ws_ref[...],
                preferred_element_type=jnp.float32)
    h = h + jnp.dot(act_f32.astype(bf16), wa_ref[...],
                    preferred_element_type=jnp.float32)
    h = jnp.maximum(h + b1_ref[...], 0.0)

    # l1_1 + relu : 896 -> 512 (padded 800 -> 400)
    h = jnp.dot(h.astype(bf16), w11_ref[...], preferred_element_type=jnp.float32)
    h = jnp.maximum(h + b11_ref[...], 0.0)

    # l2 + relu : 512 -> 384 (padded 400 -> 300)
    h = jnp.dot(h.astype(bf16), w2_ref[...], preferred_element_type=jnp.float32)
    h = jnp.maximum(h + b2_ref[...], 0.0)

    # l3 + scaled tanh : 384 -> 128 (padded 300 -> A)
    h = jnp.dot(h.astype(bf16), w3_ref[...], preferred_element_type=jnp.float32)
    a = scale * jnp.tanh(h + b3_ref[...])                   # scale = phi * max_action

    # residual add + clamp (lane-dense 128-wide store; sliced in wrapper)
    out_ref[...] = jnp.clip(a + act_f32, -max_action, max_action)


# ---------------------------------------------------------------------------
# One-time parameter preparation: transpose, split l1, zero-pad, cast to bf16.
# ---------------------------------------------------------------------------
def prepare_params(params, state_dim, action_dim):
    w1, b1, w11, b11, w2, b2, w3, b3 = params      # PyTorch layout: w is [out, in]

    S_pad = _round_up(state_dim, 128)
    A_pad = _round_up(action_dim, 128)
    H1, H2, H3 = 896, 512, 384                     # 800, 400, 300 padded to 128-multiples

    def pad2(w, rows, cols):
        return jnp.pad(w, ((0, rows - w.shape[0]), (0, cols - w.shape[1])))

    def padb(b, n):
        return jnp.pad(b, (0, n - b.shape[0])).reshape(1, n).astype(jnp.float32)

    bf16 = jnp.bfloat16
    w1t = w1.T                                     # [S+A, 800]
    return dict(
        ws=pad2(w1t[:state_dim], S_pad, H1).astype(bf16),
        wa=pad2(w1t[state_dim:], A_pad, H1).astype(bf16),
        b1=padb(b1, H1),
        w11=pad2(w11.T, H1, H2).astype(bf16),
        b11=padb(b11, H2),
        w2=pad2(w2.T, H2, H3).astype(bf16),
        b2=padb(b2, H3),
        w3=pad2(w3.T, H3, A_pad).astype(bf16),
        b3=padb(b3, A_pad),
        dims=(S_pad, A_pad, H1, H2, H3),
    )


# ---------------------------------------------------------------------------
# Wrapper
# ---------------------------------------------------------------------------
def actor_forward(prep, state, action, *, max_action, phi):
    B, _ = state.shape
    action_dim = action.shape[1]
    S_pad, A_pad, H1, H2, H3 = prep["dims"]

    # Batch tiling: at small B this is a single grid step; at large B it
    # pipelines activation DMA against the MXU with weights staying resident.
    TB = min(256, _round_up(B, 8))
    B_pad = _round_up(B, TB)

    def pad_batch(x, feat_pad):
        return jnp.pad(x.astype(jnp.float32),
                       ((0, B_pad - x.shape[0]), (0, feat_pad - x.shape[1])))

    s = pad_batch(state, S_pad)
    a = pad_batch(action, A_pad)

    kernel = functools.partial(actor_kernel,
                               max_action=float(max_action),
                               scale=float(phi) * float(max_action))

    def tiled(shape):      # batch-tiled activations / output
        return pl.BlockSpec(shape, lambda i: (i, 0))

    def resident(shape):   # weights & biases: DMA once, reused every batch tile
        return pl.BlockSpec(shape, lambda i: (0, 0))

    out = pl.pallas_call(
        kernel,
        out_shape=jax.ShapeDtypeStruct((B_pad, A_pad), jnp.float32),
        grid=(B_pad // TB,),
        in_specs=[
            tiled((TB, S_pad)), tiled((TB, A_pad)),
            resident((S_pad, H1)), resident((A_pad, H1)), resident((1, H1)),
            resident((H1, H2)), resident((1, H2)),
            resident((H2, H3)), resident((1, H3)),
            resident((H3, A_pad)), resident((1, A_pad)),
        ],
        out_specs=tiled((TB, A_pad)),
        compiler_params=pltpu.CompilerParams(
            dimension_semantics=("parallel",),
            vmem_limit_bytes=64 << 20),
    )(s, a,
      prep["ws"], prep["wa"], prep["b1"],
      prep["w11"], prep["b11"],
      prep["w2"], prep["b2"],
      prep["w3"], prep["b3"])

    return out[:B, :action_dim]


# ---------------------------------------------------------------------------
# Deterministic parameter init (PyTorch nn.Linear-style uniform bounds)
# ---------------------------------------------------------------------------
def init_linear(key, in_dim, out_dim):
    kw, kb = jax.random.split(key)
    bound = 1.0 / jnp.sqrt(in_dim)
    w = jax.random.uniform(kw, (out_dim, in_dim), jnp.float32, -bound, bound)
    b = jax.random.uniform(kb, (out_dim,), jnp.float32, -bound, bound)
    return w, b


def make_params(key, state_dim, action_dim):
    k1, k2, k3, k4 = jax.random.split(key, 4)
    w1, b1 = init_linear(k1, state_dim + action_dim, 800)
    w11, b11 = init_linear(k2, 800, 400)
    w2, b2 = init_linear(k3, 400, 300)
    w3, b3 = init_linear(k4, 300, action_dim)
    return (w1, b1, w11, b11, w2, b2, w3, b3)


# ---------------------------------------------------------------------------
# References
# ---------------------------------------------------------------------------
def actor_reference_f32(params, state, action, *, max_action, phi):
    w1, b1, w11, b11, w2, b2, w3, b3 = params
    sa = jnp.concatenate([state, action], axis=1)
    a = jax.nn.relu(sa @ w1.T + b1)
    a = jax.nn.relu(a @ w11.T + b11)
    a = jax.nn.relu(a @ w2.T + b2)
    a = phi * max_action * jnp.tanh(a @ w3.T + b3)
    return jnp.clip(a + action, -max_action, max_action)


def actor_reference_bf16(params, state, action, *, max_action, phi):
    # Mimics the kernel's precision: bf16 matmul operands, f32 accumulation.
    bf16 = jnp.bfloat16

    def lin(x, w, b):
        return jnp.dot(x.astype(bf16), w.T.astype(bf16),
                       preferred_element_type=jnp.float32) + b

    w1, b1, w11, b11, w2, b2, w3, b3 = params
    sa = jnp.concatenate([state, action], axis=1)
    a = jax.nn.relu(lin(sa, w1, b1))
    a = jax.nn.relu(lin(a, w11, b11))
    a = jax.nn.relu(lin(a, w2, b2))
    a = phi * max_action * jnp.tanh(lin(a, w3, b3))
    return jnp.clip(a + action, -max_action, max_action)


if __name__ == "__main__":
    # TODO(synk): only forward() is implemented; Actor.evaluate() (Normal
    # rsample / log_prob) is distributional sampling outside this kernel.
    state_dim, action_dim = 17, 6
    batch = 8
    max_action, phi = 1.0, 0.05

    key = jax.random.PRNGKey(0)
    kp, ks, ka = jax.random.split(key, 3)

    params = make_params(kp, state_dim, action_dim)
    prep = prepare_params(params, state_dim, action_dim)

    state = jax.random.normal(ks, (batch, state_dim), jnp.float32)
    action = jax.random.uniform(ka, (batch, action_dim), jnp.float32, -1.0, 1.0)

    out = actor_forward(prep, state, action, max_action=max_action, phi=phi)
    out = jax.block_until_ready(out)
    assert out.shape == (batch, action_dim)

    ref16 = actor_reference_bf16(params, state, action,
                                 max_action=max_action, phi=phi)
    ref32 = actor_reference_f32(params, state, action,
                                max_action=max_action, phi=phi)
    assert jnp.allclose(out, ref16, atol=1e-3, rtol=1e-3), "mismatch vs bf16 reference"
    assert jnp.allclose(out, ref32, atol=3e-2, rtol=0.0), "mismatch vs f32 reference"

    print("KERNEL_OK")
</pallas_src>

<mosaic_0001>
module attributes {stable_mosaic.version = 11 : i64} {
  func.func @actor_kernel(%arg0: i32, %arg1: memref<8x128xf32, #tpu.memory_space<vmem>>, %arg2: memref<8x128xf32, #tpu.memory_space<vmem>>, %arg3: memref<128x896xbf16, #tpu.memory_space<vmem>>, %arg4: memref<128x896xbf16, #tpu.memory_space<vmem>>, %arg5: memref<1x896xf32, #tpu.memory_space<vmem>>, %arg6: memref<896x512xbf16, #tpu.memory_space<vmem>>, %arg7: memref<1x512xf32, #tpu.memory_space<vmem>>, %arg8: memref<512x384xbf16, #tpu.memory_space<vmem>>, %arg9: memref<1x384xf32, #tpu.memory_space<vmem>>, %arg10: memref<384x128xbf16, #tpu.memory_space<vmem>>, %arg11: memref<1x128xf32, #tpu.memory_space<vmem>>, %arg12: memref<8x128xf32, #tpu.memory_space<vmem>>) attributes {dimension_semantics = [#tpu.dimension_semantics<parallel>], iteration_bounds = array<i64: 1>, scalar_prefetch = 0 : i64, scratch_operands = 0 : i64, tpu.core_type = #tpu.core_type<tc>, window_params = [{transform_indices = @transform_0, window_bounds = array<i64: 8, 128>}, {transform_indices = @transform_1, window_bounds = array<i64: 8, 128>}, {pipeline_mode = #tpu.pipeline_mode<synchronous>, transform_indices = @transform_2, window_bounds = array<i64: 128, 896>}, {pipeline_mode = #tpu.pipeline_mode<synchronous>, transform_indices = @transform_3, window_bounds = array<i64: 128, 896>}, {pipeline_mode = #tpu.pipeline_mode<synchronous>, transform_indices = @transform_4, window_bounds = array<i64: 1, 896>}, {pipeline_mode = #tpu.pipeline_mode<synchronous>, transform_indices = @transform_5, window_bounds = array<i64: 896, 512>}, {pipeline_mode = #tpu.pipeline_mode<synchronous>, transform_indices = @transform_6, window_bounds = array<i64: 1, 512>}, {pipeline_mode = #tpu.pipeline_mode<synchronous>, transform_indices = @transform_7, window_bounds = array<i64: 512, 384>}, {pipeline_mode = #tpu.pipeline_mode<synchronous>, transform_indices = @transform_8, window_bounds = array<i64: 1, 384>}, {pipeline_mode = #tpu.pipeline_mode<synchronous>, transform_indices = @transform_9, window_bounds = array<i64: 384, 128>}, {pipeline_mode = #tpu.pipeline_mode<synchronous>, transform_indices = @transform_10, window_bounds = array<i64: 1, 128>}, {transform_indices = @transform_11, window_bounds = array<i64: 8, 128>}]} {
    %c0 = arith.constant 0 : index
    %c0_0 = arith.constant 0 : index
    %0 = vector.load %arg2[%c0, %c0_0] : memref<8x128xf32, #tpu.memory_space<vmem>>, vector<8x128xf32>
    %c0_1 = arith.constant 0 : index
    %c0_2 = arith.constant 0 : index
    %1 = vector.load %arg1[%c0_1, %c0_2] : memref<8x128xf32, #tpu.memory_space<vmem>>, vector<8x128xf32>
    %2 = arith.truncf %1 : vector<8x128xf32> to vector<8x128xbf16>
    %c0_3 = arith.constant 0 : index
    %c0_4 = arith.constant 0 : index
    %3 = vector.load %arg3[%c0_3, %c0_4] : memref<128x896xbf16, #tpu.memory_space<vmem>>, vector<128x896xbf16>
    %cst = arith.constant dense<0.000000e+00> : vector<8x896xf32>
    %4 = tpu.matmul %2, %3, %cst {dimension_numbers = #tpu.dot_dimension_numbers<[1], [0], [0], [1], [0, 0, 1, 1], [], []>} : vector<8x128xbf16>, vector<128x896xbf16>, vector<8x896xf32> -> vector<8x896xf32>
    %5 = arith.truncf %0 : vector<8x128xf32> to vector<8x128xbf16>
    %c0_5 = arith.constant 0 : index
    %c0_6 = arith.constant 0 : index
    %6 = vector.load %arg4[%c0_5, %c0_6] : memref<128x896xbf16, #tpu.memory_space<vmem>>, vector<128x896xbf16>
    %cst_7 = arith.constant dense<0.000000e+00> : vector<8x896xf32>
    %7 = tpu.matmul %5, %6, %cst_7 {dimension_numbers = #tpu.dot_dimension_numbers<[1], [0], [0], [1], [0, 0, 1, 1], [], []>} : vector<8x128xbf16>, vector<128x896xbf16>, vector<8x896xf32> -> vector<8x896xf32>
    %8 = arith.addf %4, %7 : vector<8x896xf32>
    %c0_8 = arith.constant 0 : index
    %c0_9 = arith.constant 0 : index
    %9 = vector.load %arg5[%c0_8, %c0_9] : memref<1x896xf32, #tpu.memory_space<vmem>>, vector<1x896xf32>
    %10 = vector.broadcast %9 : vector<1x896xf32> to vector<8x896xf32>
    %11 = arith.addf %8, %10 : vector<8x896xf32>
    %cst_10 = arith.constant 0.000000e+00 : f32
    %12 = vector.broadcast %cst_10 : f32 to vector<8x896xf32>
    %13 = arith.maximumf %11, %12 : vector<8x896xf32>
    %14 = arith.truncf %13 : vector<8x896xf32> to vector<8x896xbf16>
    %c0_11 = arith.constant 0 : index
    %c0_12 = arith.constant 0 : index
    %15 = vector.load %arg6[%c0_11, %c0_12] : memref<896x512xbf16, #tpu.memory_space<vmem>>, vector<896x512xbf16>
    %cst_13 = arith.constant dense<0.000000e+00> : vector<8x512xf32>
    %16 = tpu.matmul %14, %15, %cst_13 {dimension_numbers = #tpu.dot_dimension_numbers<[1], [0], [0], [1], [0, 0, 1, 1], [], []>} : vector<8x896xbf16>, vector<896x512xbf16>, vector<8x512xf32> -> vector<8x512xf32>
    %c0_14 = arith.constant 0 : index
    %c0_15 = arith.constant 0 : index
    %17 = vector.load %arg7[%c0_14, %c0_15] : memref<1x512xf32, #tpu.memory_space<vmem>>, vector<1x512xf32>
    %18 = vector.broadcast %17 : vector<1x512xf32> to vector<8x512xf32>
    %19 = arith.addf %16, %18 : vector<8x512xf32>
    %cst_16 = arith.constant 0.000000e+00 : f32
    %20 = vector.broadcast %cst_16 : f32 to vector<8x512xf32>
    %21 = arith.maximumf %19, %20 : vector<8x512xf32>
    %22 = arith.truncf %21 : vector<8x512xf32> to vector<8x512xbf16>
    %c0_17 = arith.constant 0 : index
    %c0_18 = arith.constant 0 : index
    %23 = vector.load %arg8[%c0_17, %c0_18] : memref<512x384xbf16, #tpu.memory_space<vmem>>, vector<512x384xbf16>
    %cst_19 = arith.constant dense<0.000000e+00> : vector<8x384xf32>
    %24 = tpu.matmul %22, %23, %cst_19 {dimension_numbers = #tpu.dot_dimension_numbers<[1], [0], [0], [1], [0, 0, 1, 1], [], []>} : vector<8x512xbf16>, vector<512x384xbf16>, vector<8x384xf32> -> vector<8x384xf32>
    %c0_20 = arith.constant 0 : index
    %c0_21 = arith.constant 0 : index
    %25 = vector.load %arg9[%c0_20, %c0_21] : memref<1x384xf32, #tpu.memory_space<vmem>>, vector<1x384xf32>
    %26 = vector.broadcast %25 : vector<1x384xf32> to vector<8x384xf32>
    %27 = arith.addf %24, %26 : vector<8x384xf32>
    %cst_22 = arith.constant 0.000000e+00 : f32
    %28 = vector.broadcast %cst_22 : f32 to vector<8x384xf32>
    %29 = arith.maximumf %27, %28 : vector<8x384xf32>
    %30 = arith.truncf %29 : vector<8x384xf32> to vector<8x384xbf16>
    %c0_23 = arith.constant 0 : index
    %c0_24 = arith.constant 0 : index
    %31 = vector.load %arg10[%c0_23, %c0_24] : memref<384x128xbf16, #tpu.memory_space<vmem>>, vector<384x128xbf16>
    %cst_25 = arith.constant dense<0.000000e+00> : vector<8x128xf32>
    %32 = tpu.matmul %30, %31, %cst_25 {dimension_numbers = #tpu.dot_dimension_numbers<[1], [0], [0], [1], [0, 0, 1, 1], [], []>} : vector<8x384xbf16>, vector<384x128xbf16>, vector<8x128xf32> -> vector<8x128xf32>
    %c0_26 = arith.constant 0 : index
    %c0_27 = arith.constant 0 : index
    %33 = vector.load %arg11[%c0_26, %c0_27] : memref<1x128xf32, #tpu.memory_space<vmem>>, vector<1x128xf32>
    %34 = vector.broadcast %33 : vector<1x128xf32> to vector<8x128xf32>
    %35 = arith.addf %32, %34 : vector<8x128xf32>
    %36 = math.tanh %35 : vector<8x128xf32>
    %cst_28 = arith.constant 5.000000e-02 : f32
    %37 = vector.broadcast %cst_28 : f32 to vector<8x128xf32>
    %38 = arith.mulf %37, %36 : vector<8x128xf32>
    %39 = arith.addf %38, %0 : vector<8x128xf32>
    %cst_29 = arith.constant -1.000000e+00 : f32
    %cst_30 = arith.constant 1.000000e+00 : f32
    %40 = vector.broadcast %cst_29 : f32 to vector<8x128xf32>
    %41 = arith.maximumf %40, %39 : vector<8x128xf32>
    %42 = vector.broadcast %cst_30 : f32 to vector<8x128xf32>
    %43 = arith.minimumf %42, %41 : vector<8x128xf32>
    %c0_31 = arith.constant 0 : index
    %c0_32 = arith.constant 0 : index
    %44 = vector.load %arg12[%c0_31, %c0_32] : memref<8x128xf32, #tpu.memory_space<vmem>>, vector<8x128xf32>
    tpu.vector_store %arg12[%c0_31, %c0_32], %43 {strides = array<i32>} : memref<8x128xf32, #tpu.memory_space<vmem>>, vector<8x128xf32>,
    return
  }
  func.func @transform_0(%arg0: i32) -> (i32, i32) {
    %c0_i32 = arith.constant 0 : i32
    %c0_i32_0 = arith.constant 0 : i32
    return %arg0, %c0_i32 : i32, i32
  }
  func.func @transform_1(%arg0: i32) -> (i32, i32) {
    %c0_i32 = arith.constant 0 : i32
    %c0_i32_0 = arith.constant 0 : i32
    return %arg0, %c0_i32 : i32, i32
  }
  func.func @transform_2(%arg0: i32) -> (i32, i32) {
    %c0_i32 = arith.constant 0 : i32
    %c0_i32_0 = arith.constant 0 : i32
    %c0_i32_1 = arith.constant 0 : i32
    return %c0_i32, %c0_i32_0 : i32, i32
  }
  func.func @transform_3(%arg0: i32) -> (i32, i32) {
    %c0_i32 = arith.constant 0 : i32
    %c0_i32_0 = arith.constant 0 : i32
    %c0_i32_1 = arith.constant 0 : i32
    return %c0_i32, %c0_i32_0 : i32, i32
  }
  func.func @transform_4(%arg0: i32) -> (i32, i32) {
    %c0_i32 = arith.constant 0 : i32
    %c0_i32_0 = arith.constant 0 : i32
    %c0_i32_1 = arith.constant 0 : i32
    return %c0_i32, %c0_i32_0 : i32, i32
  }
  func.func @transform_5(%arg0: i32) -> (i32, i32) {
    %c0_i32 = arith.constant 0 : i32
    %c0_i32_0 = arith.constant 0 : i32
    %c0_i32_1 = arith.constant 0 : i32
    return %c0_i32, %c0_i32_0 : i32, i32
  }
  func.func @transform_6(%arg0: i32) -> (i32, i32) {
    %c0_i32 = arith.constant 0 : i32
    %c0_i32_0 = arith.constant 0 : i32
    %c0_i32_1 = arith.constant 0 : i32
    return %c0_i32, %c0_i32_0 : i32, i32
  }
  func.func @transform_7(%arg0: i32) -> (i32, i32) {
    %c0_i32 = arith.constant 0 : i32
    %c0_i32_0 = arith.constant 0 : i32
    %c0_i32_1 = arith.constant 0 : i32
    return %c0_i32, %c0_i32_0 : i32, i32
  }
  func.func @transform_8(%arg0: i32) -> (i32, i32) {
    %c0_i32 = arith.constant 0 : i32
    %c0_i32_0 = arith.constant 0 : i32
    %c0_i32_1 = arith.constant 0 : i32
    return %c0_i32, %c0_i32_0 : i32, i32
  }
  func.func @transform_9(%arg0: i32) -> (i32, i32) {
    %c0_i32 = arith.constant 0 : i32
    %c0_i32_0 = arith.constant 0 : i32
    %c0_i32_1 = arith.constant 0 : i32
    return %c0_i32, %c0_i32_0 : i32, i32
  }
  func.func @transform_10(%arg0: i32) -> (i32, i32) {
    %c0_i32 = arith.constant 0 : i32
    %c0_i32_0 = arith.constant 0 : i32
    %c0_i32_1 = arith.constant 0 : i32
    return %c0_i32, %c0_i32_0 : i32, i32
  }
  func.func @transform_11(%arg0: i32) -> (i32, i32) {
    %c0_i32 = arith.constant 0 : i32
    %c0_i32_0 = arith.constant 0 : i32
    return %arg0, %c0_i32 : i32, i32
  }
}

</mosaic_0001>

<bundles_post_ra>
// kernel: tpu_custom_call.1
= control target key start
LH: loop header
LB: loop body
LE: loop exit
PB: predicated region body
PF: predicated region fallthrough
CT: control target
= control target key end

     0   :  { %16 = vsyncpa [#allocation3], 0  ;;  %s5810_s0 = inlined_call_operand.hbm [shape: f32[8,128], index: 0, kind: input, shape index: {}]   ;;  %s5811_s1 = inlined_call_operand.hbm [shape: f32[8,128], index: 1, kind: input, shape index: {}]   ;;  %s5812_s2 = inlined_call_operand.hbm [shape: bf16[128,896], index: 2, kind: input, shape index: {}]   ;;  %s5813_s3 = inlined_call_operand.hbm [shape: bf16[128,896], index: 3, kind: input, shape index: {}]   ;;  %s5814_s4 = inlined_call_operand.vmem [shape: f32[1,896], index: 4, kind: input, shape index: {}]   ;;  %s5815_s5 = inlined_call_operand.hbm [shape: bf16[896,512], index: 5, kind: input, shape index: {}]   ;;  %s5816_s6 = inlined_call_operand.hbm [shape: f32[1,512], index: 6, kind: input, shape index: {}]   ;;  %s5817_s7 = inlined_call_operand.hbm [shape: bf16[512,384], index: 7, kind: input, shape index: {}]   ;;  %s5818_s8 = inlined_call_operand.vmem [shape: f32[1,384], index: 8, kind: input, shape index: {}]   ;;  %s5819_s9 = inlined_call_operand.hbm [shape: bf16[384,128], index: 9, kind: input, shape index: {}]   ;;  %s5820_s10 = inlined_call_operand.vmem [shape: f32[1,128], index: 10, kind: input, shape index: {}]   ;;  %s5821_s11 = inlined_call_operand.hbm [shape: f32[8,128], index: 11, kind: output, shape index: {}]  }
   0x1   :  { %17 = vsyncpa [#allocation6], 0 }
   0x2   :  { %18 = vsyncpa [#allocation9], 0 }
   0x3   :  { %19 = vsyncpa [#allocation12], 0 }
   0x4   :  { %20 = vsyncpa [#allocation15], 0 }
   0x5   :  { %21 = vsyncpa [#allocation4], 0  ;;  %s5540_s17 = smov [#allocation5]  }
   0x6   :  { %s38_s18 = sshll.u32 %s5540_s17, 4  ;;  %s39_s18 = int_to_ptr.vmem [resolvable:$true] %s38_s18 }
   0x7   :  { %s5356_s19 = scalar_lea.vmem %s39_s18, 128  ;;  %p5361_p1 = scmp.lt.s32.totalorder %s39_s18, %s39_s18 }
   0x8   :  { %p5357_p0 = scmp.ne.s32.totalorder %s39_s18, %s5356_s19  ;;  %p5362_p2 = scmp.lt.s32.totalorder %s5356_s19, %s5356_s19 }
   0xa   :  { %p5363_p3 = por %p5362_p2, %p5361_p1 }
   0xc   :  { %p5364_p4 = pnand %p5363_p3, %p5357_p0 }
   0xe   :  { %5367 = shalt.err (!%p5364_p4)
}
   0xf   :  { %41 = dma.hbm_to_vmem [thread:$0]  %s5811_s1, 128, %s39_s18, [#allocation6]  }
  0x10   :  { %s5541_s22 = smov [#allocation8]   ;;  %s5542_s24 = smov [#allocation11]  }
  0x11   :  { %s59_s23 = sshll.u32 %s5541_s22, 4  ;;  %s86_s25 = sshll.u32 %s5542_s24, 4  ;;  %s60_s23 = int_to_ptr.vmem [resolvable:$true] %s59_s23  ;;  %s87_s25 = int_to_ptr.vmem [resolvable:$true] %s86_s25 }
  0x12   :  { %s5376_s26 = scalar_lea.vmem %s60_s23, 7168  ;;  %p5381_p6 = scmp.lt.s32.totalorder %s60_s23, %s60_s23 }
  0x13   :  { %p5377_p5 = scmp.ne.s32.totalorder %s60_s23, %s5376_s26  ;;  %p5382_p7 = scmp.lt.s32.totalorder %s5376_s26, %s5376_s26 }
  0x15   :  { %p5383_p8 = por %p5382_p7, %p5381_p6 }
  0x17   :  { %p5384_p9 = pnand %p5383_p8, %p5377_p5 }
  0x19   :  { %5387 = shalt.err (!%p5384_p9)
}
  0x1a   :  { %s5543_s27 = smov 448   ;;  %s5544_s28 = smov 28  }
  0x1b   :  { %65 = dma.hbm_to_vmem [thread:$0]  %s5813_s3, 7168, %s60_s23, [#allocation9], %s5543_s27, %s5543_s27, %s5544_s28  }
  0x1c   :  { %s5396_s1 = scalar_lea.vmem %s87_s25, 64  ;;  %p5401_p11 = scmp.lt.s32.totalorder %s87_s25, %s87_s25 }
  0x1d   :  { %p5397_p10 = scmp.ne.s32.totalorder %s87_s25, %s5396_s1  ;;  %p5402_p12 = scmp.lt.s32.totalorder %s5396_s1, %s5396_s1 }
  0x1f   :  { %p5403_p13 = por %p5402_p12, %p5401_p11 }
  0x21   :  { %p5404_p0 = pnand %p5403_p13, %p5397_p10 }
  0x23   :  { %5407 = shalt.err (!%p5404_p0)
}
  0x24   :  { %89 = dma.hbm_to_vmem [thread:$0]  %s5816_s6, 64, %s87_s25, [#allocation12]  }
  0x25   :  { %s5545_s14 = smov [#allocation2]   ;;  %s5546_s16 = smov [#allocation7]  }
  0x26   :  { %s28_s15 = sshll.u32 %s5545_s14, 4  ;;  %s47_s17 = sshll.u32 %s5546_s16, 4  ;;  %s29_s15 = int_to_ptr.vmem [resolvable:$true] %s28_s15  ;;  %s48_s17 = int_to_ptr.vmem [resolvable:$true] %s47_s17 }
  0x27   :  { %s5416_s18 = scalar_lea.vmem %s29_s15, 128  ;;  %p5421_p2 = scmp.lt.s32.totalorder %s29_s15, %s29_s15 }
  0x28   :  { %p5417_p1 = scmp.ne.s32.totalorder %s29_s15, %s5416_s18  ;;  %p5422_p3 = scmp.lt.s32.totalorder %s5416_s18, %s5416_s18 }
  0x2a   :  { %p5423_p4 = por %p5422_p3, %p5421_p2 }
  0x2c   :  { %p5424_p5 = pnand %p5423_p4, %p5417_p1 }
  0x2e   :  { %5427 = shalt.err (!%p5424_p5)
}
  0x2f   :  { %31 = dma.hbm_to_vmem [thread:$0]  %s5810_s0, 128, %s29_s15, [#allocation3]  }
  0x30   :  { %s5436_s20 = scalar_lea.vmem %s48_s17, 7168  ;;  %p5441_p7 = scmp.lt.s32.totalorder %s48_s17, %s48_s17 }
  0x31   :  { %p5437_p6 = scmp.ne.s32.totalorder %s48_s17, %s5436_s20  ;;  %p5442_p8 = scmp.lt.s32.totalorder %s5436_s20, %s5436_s20 }
  0x33   :  { %p5443_p9 = por %p5442_p8, %p5441_p7 }
  0x35   :  { %p5444_p10 = pnand %p5443_p9, %p5437_p6 }
  0x37   :  { %5447 = shalt.err (!%p5444_p10)
}
  0x38   :  { %53 = dma.hbm_to_vmem [thread:$0]  %s5812_s2, 7168, %s48_s17, [#allocation6], %s5543_s27, %s5543_s27, %s5544_s28  }
  0x39   :  { %s5547_s22 = smov [#allocation10]  }
  0x3a   :  { %s73_s23 = sshll.u32 %s5547_s22, 4  ;;  %s74_s23 = int_to_ptr.vmem [resolvable:$true] %s73_s23 }
  0x3b   :  { %s5456_s24 = scalar_lea.vmem %s74_s23, 28672  ;;  %p5461_p12 = scmp.lt.s32.totalorder %s74_s23, %s74_s23 }
  0x3c   :  { %p5457_p11 = scmp.ne.s32.totalorder %s74_s23, %s5456_s24  ;;  %p5462_p13 = scmp.lt.s32.totalorder %s5456_s24, %s5456_s24 }
  0x3e   :  { %p5463_p0 = por %p5462_p13, %p5461_p12 }
  0x40   :  { %p5464_p1 = pnand %p5463_p0, %p5457_p11 }
  0x42   :  { %5467 = shalt.err (!%p5464_p1)
}
  0x43   :  { %s5548_s0 = smov 256   ;;  %s5549_s25 = smov 16  }
  0x44   :  { %79 = dma.hbm_to_vmem [thread:$0]  %s5815_s5, 28672, %s74_s23, [#allocation9], %s5548_s0, %s5548_s0, %s5549_s25  }
  0x45   :  { %s5550_s30 = smov [#allocation13]  }
  0x46   :  { %s95_s1 = sshll.u32 %s5550_s30, 4  ;;  %s96_s1 = int_to_ptr.vmem [resolvable:$true] %s95_s1 }
  0x47   :  { %s5476_s2 = scalar_lea.vmem %s96_s1, 12288  ;;  %p5481_p3 = scmp.lt.s32.totalorder %s96_s1, %s96_s1 }
  0x48   :  { %p5477_p2 = scmp.ne.s32.totalorder %s96_s1, %s5476_s2  ;;  %p5482_p4 = scmp.lt.s32.totalorder %s5476_s2, %s5476_s2 }
  0x4a   :  { %p5483_p5 = por %p5482_p4, %p5481_p3 }
  0x4c   :  { %p5484_p6 = pnand %p5483_p5, %p5477_p2 }
  0x4e   :  { %5487 = shalt.err (!%p5484_p6)
}
  0x4f   :  { %s5551_s27 = smov 192   ;;  %s5552_s28 = smov 12  }
  0x50   :  { %101 = dma.hbm_to_vmem [thread:$0]  %s5817_s7, 12288, %s96_s1, [#allocation12], %s5551_s27, %s5551_s27, %s5552_s28  }
  0x51   :  { %s5553_s14 = smov [#allocation14]  }
  0x52   :  { %s109_s15 = sshll.u32 %s5553_s14, 4  ;;  %s110_s15 = int_to_ptr.vmem [resolvable:$true] %s109_s15 }
  0x53   :  { %s5496_s5 = scalar_lea.vmem %s110_s15, 3072  ;;  %p5501_p8 = scmp.lt.s32.totalorder %s110_s15, %s110_s15 }
  0x54   :  { %p5497_p7 = scmp.ne.s32.totalorder %s110_s15, %s5496_s5  ;;  %p5502_p9 = scmp.lt.s32.totalorder %s5496_s5, %s5496_s5 }
  0x56   :  { %p5503_p10 = por %p5502_p9, %p5501_p8 }
  0x58   :  { %p5504_p11 = pnand %p5503_p10, %p5497_p7 }
  0x5a   :  { %5507 = shalt.err (!%p5504_p11)
}
  0x5b   :  { %s5554_s16 = smov 64   ;;  %s5555_s17 = smov 4  }
  0x5c   :  { %115 = dma.hbm_to_vmem [thread:$0]  %s5819_s9, 3072, %s110_s15, [#allocation15], %s5554_s16, %s5554_s16, %s5555_s17  }
  0x5d   :  { %5528 = dma.done.wait [#allocation3], 128  }
  0x5e   :  { %5529 = vsyncadd [#allocation3], 4294967168 }
  0x5f   :  { %5530 = dma.done.wait [#allocation6], 7296  }
  0x60   :  { %5531 = vsyncadd [#allocation6], 4294960000 }
  0x61   :  { %5532 = dma.done.wait [#allocation9], 35840  }
  0x62   :  { %5533 = vsyncadd [#allocation9], 4294931456 }
  0x63   :  { %5534 = dma.done.wait [#allocation12], 12352  }
  0x64   :  { %5535 = vsyncadd [#allocation12], 4294954944 }
  0x65   :  { %5536 = dma.done.wait [#allocation15], 3072  }
  0x66   :  { %5537 = vsyncadd [#allocation15], 4294964224  ;;  %v5556_v0 = vmov 0   ;;  %v4697_v1 = vld [vmem:[#allocation8 + $0x18c] ss:$28 sps:$4 sm:$0xff]   ;;  %v143_v33 = vld [vmem:[#allocation5] sm:$0xff] }
  0x67   :  { %595 = vmatprep.mubr.bf16.mxu0 %v5556_v0  ;;  %636 = vmatprep.mubr.bf16.mxu1 %v5556_v0  ;;  %v4699_v2 = vld [vmem:[#allocation8 + $0x194] ss:$28 sps:$4 sm:$0xff]   ;;  %v4701_v3 = vld [vmem:[#allocation8 + $0x188] ss:$28 sps:$4 sm:$0xff]   ;;  %v4705_v6 = vld [vmem:[#allocation8 + $0x15c] ss:$28 sps:$4 sm:$0xff]   ;;  %v5652_v35 = vpack.c.bf16 %v143_v33, %v143_v33 }
  0x68   :  { %563 = vmatprep.subr.bf16.mxu0 %v4697_v1  ;;  %v4702_v4 = vld [vmem:[#allocation8 + $0x190] ss:$28 sps:$4 sm:$0xff]   ;;  %604 = vmatprep.subr.bf16.mxu1 %v4699_v2  ;;  %v4708_v8 = vld [vmem:[#allocation8 + $0x158] ss:$28 sps:$4 sm:$0xff]   ;;  %v4711_v10 = vld [vmem:[#allocation8 + $0x124] ss:$28 sps:$4 sm:$0xff]  }
  0x69   :  { %v4703_v5 = vld [vmem:[#allocation8 + $0x154] ss:$28 sps:$4 sm:$0xff]   ;;  %564 = vmatpush1.bf16.msra.mxu0 %v4701_v3  ;;  %605 = vmatpush1.bf16.msra.mxu1 %v4702_v4  ;;  %v4709_v9 = vld [vmem:[#allocation8 + $0x11c] ss:$28 sps:$4 sm:$0xff]   ;;  %v4715_v13 = vld [vmem:[#allocation8 + $0xe4] ss:$28 sps:$4 sm:$0xff]  }
  0x6a   :  { %v4707_v7 = vld [vmem:[#allocation8 + $0x150] ss:$28 sps:$4 sm:$0xff]   ;;  %565 = vmatprep.subr.bf16.mxu0 %v4703_v5  ;;  %606 = vmatprep.subr.bf16.mxu1 %v4705_v6  ;;  %v4713_v11 = vld [vmem:[#allocation8 + $0x118] ss:$28 sps:$4 sm:$0xff]   ;;  %v4714_v12 = vld [vmem:[#allocation8 + $0x120] ss:$28 sps:$4 sm:$0xff]  }
  0x6b   :  { %v4717_v14 = vld [vmem:[#allocation8 + $0xec] ss:$28 sps:$4 sm:$0xff]   ;;  %v4719_v15 = vld [vmem:[#allocation8 + $0xe0] ss:$28 sps:$4 sm:$0xff]   ;;  %v4723_v18 = vld [vmem:[#allocation8 + $0xb4] ss:$28 sps:$4 sm:$0xff]  }
  0x6c   :  { %v4720_v16 = vld [vmem:[#allocation8 + $0xe8] ss:$28 sps:$4 sm:$0xff]   ;;  %v4726_v20 = vld [vmem:[#allocation8 + $0xb0] ss:$28 sps:$4 sm:$0xff]   ;;  %v4729_v22 = vld [vmem:[#allocation8 + $0x7c] ss:$28 sps:$4 sm:$0xff]  }
  0x6d   :  { %566 = vmatpush1.bf16.msra.mxu0 %v4707_v7  ;;  %607 = vmatpush1.bf16.msra.mxu1 %v4708_v8  ;;  %v4721_v17 = vld [vmem:[#allocation8 + $0xac] ss:$28 sps:$4 sm:$0xff]   ;;  %v4727_v21 = vld [vmem:[#allocation8 + $0x74] ss:$28 sps:$4 sm:$0xff]   ;;  %v4733_v25 = vld [vmem:[#allocation8 + $0x3c] ss:$28 sps:$4 sm:$0xff]  }
  0x6e   :  { %567 = vmatprep.subr.bf16.mxu0 %v4709_v9  ;;  %608 = vmatprep.subr.bf16.mxu1 %v4711_v10  ;;  %v4725_v19 = vld [vmem:[#allocation8 + $0xa8] ss:$28 sps:$4 sm:$0xff]   ;;  %v4731_v23 = vld [vmem:[#allocation8 + $0x70] ss:$28 sps:$4 sm:$0xff]   ;;  %v4732_v24 = vld [vmem:[#allocation8 + $0x78] ss:$28 sps:$4 sm:$0xff]  }
  0x6f   :  { %v4735_v26 = vld [vmem:[#allocation8 + $0x44] ss:$28 sps:$4 sm:$0xff]   ;;  %v4737_v27 = vld [vmem:[#allocation8 + $0x38] ss:$28 sps:$4 sm:$0xff]   ;;  %v4741_v30 = vld [vmem:[#allocation8 + $0xc] ss:$28 sps:$4 sm:$0xff]  }
  0x70   :  { %v4738_v28 = vld [vmem:[#allocation8 + $0x40] ss:$28 sps:$4 sm:$0xff]   ;;  %v4744_v32 = vld [vmem:[#allocation8 + $0x8] ss:$28 sps:$4 sm:$0xff]   ;;  %v4745_v36 = vld [vmem:[#allocation8 + $0x198] ss:$28 sps:$4 sm:$0xff]  }
  0x71   :  { %568 = vmatpush1.bf16.msra.mxu0 %v4713_v11  ;;  %609 = vmatpush1.bf16.msra.mxu1 %v4714_v12  ;;  %v4739_v29 = vld [vmem:[#allocation8 + $0x4] ss:$28 sps:$4 sm:$0xff]   ;;  %v4747_v34 = vld [vmem:[#allocation8 + $0x19c] ss:$28 sps:$4 sm:$0xff]   ;;  %v5557_v38 = vmov 0.0   ;;  %vm5558_vm0 = vmmov 0  }
  0x72   :  { %569 = vmatprep.subr.bf16.mxu0 %v4715_v13  ;;  %610 = vmatprep.subr.bf16.mxu1 %v4717_v14  ;;  %v4743_v31 = vld [vmem:[#allocation8] ss:$28 sps:$4 sm:$0xff]   ;;  %v4752_v41 = vld [vmem:[#allocation8 + $0x168] ss:$28 sps:$4 sm:$0xff]   ;;  %v4756_v44 = vld [vmem:[#allocation8 + $0x130] ss:$28 sps:$4 sm:$0xff]  }
  0x73   :  { %v4748_v37 = vld [vmem:[#allocation8 + $0x1a0] ss:$28 sps:$4 sm:$0xff]   ;;  %v4755_v42 = vld [vmem:[#allocation8 + $0x12c] ss:$28 sps:$4 sm:$0xff]   ;;  %v4759_v45 = vld [vmem:[#allocation8 + $0xf4] ss:$28 sps:$4 sm:$0xff]  }
  0x74   :  { %v4751_v39 = vld [vmem:[#allocation8 + $0x164] ss:$28 sps:$4 sm:$0xff]   ;;  %v4757_v46 = vld [vmem:[#allocation8 + $0xf0] ss:$28 sps:$4 sm:$0xff]   ;;  %v4760_v47 = vld [vmem:[#allocation8 + $0xf8] ss:$28 sps:$4 sm:$0xff]  }
  0x75   :  { %570 = vmatpush1.bf16.msra.mxu0 %v4719_v15  ;;  %611 = vmatpush1.bf16.msra.mxu1 %v4720_v16  ;;  %v4749_v40 = vld [vmem:[#allocation8 + $0x160] ss:$28 sps:$4 sm:$0xff]   ;;  %v4753_v43 = vld [vmem:[#allocation8 + $0x128] ss:$28 sps:$4 sm:$0xff]   ;;  %v4761_v49 = vld [vmem:[#allocation8 + $0xb8] ss:$28 sps:$4 sm:$0xff]  }
  0x76   :  { %571 = vmatprep.subr.bf16.mxu0 %v4721_v17  ;;  %612 = vmatprep.subr.bf16.mxu1 %v4723_v18  ;;  %v4763_v48 = vld [vmem:[#allocation8 + $0xbc] ss:$28 sps:$4 sm:$0xff]   ;;  %v4767_v51 = vld [vmem:[#allocation8 + $0x84] ss:$28 sps:$4 sm:$0xff]   ;;  %v4771_v54 = vld [vmem:[#allocation8 + $0x4c] ss:$28 sps:$4 sm:$0xff]  }
  0x77   :  { %v4764_v50 = vld [vmem:[#allocation8 + $0xc0] ss:$28 sps:$4 sm:$0xff]   ;;  %v4768_v53 = vld [vmem:[#allocation8 + $0x88] ss:$28 sps:$4 sm:$0xff]   ;;  %v4772_v56 = vld [vmem:[#allocation8 + $0x50] ss:$28 sps:$4 sm:$0xff]  }
  0x78   :  { %v4765_v52 = vld [vmem:[#allocation8 + $0x80] ss:$28 sps:$4 sm:$0xff]   ;;  %v4769_v55 = vld [vmem:[#allocation8 + $0x48] ss:$28 sps:$4 sm:$0xff]   ;;  %v4775_v57 = vld [vmem:[#allocation8 + $0x14] ss:$28 sps:$4 sm:$0xff]  }
  0x79   :  { %572 = vmatpush1.bf16.msra.mxu0 %v4725_v19  ;;  %613 = vmatpush1.bf16.msra.mxu1 %v4726_v20  ;;  %v4773_v58 = vld [vmem:[#allocation8 + $0x10] ss:$28 sps:$4 sm:$0xff]   ;;  %v4776_v59 = vld [vmem:[#allocation8 + $0x18] ss:$28 sps:$4 sm:$0xff]   ;;  %v4777_v62 = vld [vmem:[#allocation7 + $0x188] ss:$28 sps:$4 sm:$0xff]  }
  0x7a   :  { %573 = vmatprep.subr.bf16.mxu0 %v4727_v21  ;;  %614 = vmatprep.subr.bf16.mxu1 %v4729_v22  ;;  %v4779_v60 = vld [vmem:[#allocation7 + $0x18c] ss:$28 sps:$4 sm:$0xff]   ;;  %v4782_v61 = vld [vmem:[#allocation7 + $0x194] ss:$28 sps:$4 sm:$0xff]   ;;  %v4788_v2 = vld [vmem:[#allocation7 + $0x15c] ss:$28 sps:$4 sm:$0xff]  }
  0x7b   :  { %v4780_v63 = vld [vmem:[#allocation7 + $0x190] ss:$28 sps:$4 sm:$0xff]   ;;  %v4786_v4 = vld [vmem:[#allocation7 + $0x158] ss:$28 sps:$4 sm:$0xff]   ;;  %v4794_v6 = vld [vmem:[#allocation7 + $0x124] ss:$28 sps:$4 sm:$0xff]  }
  0x7c   :  { %v4785_v1 = vld [vmem:[#allocation7 + $0x154] ss:$28 sps:$4 sm:$0xff]   ;;  %v4791_v5 = vld [vmem:[#allocation7 + $0x11c] ss:$28 sps:$4 sm:$0xff]   ;;  %v4797_v9 = vld [vmem:[#allocation7 + $0xe4] ss:$28 sps:$4 sm:$0xff]  }
  0x7d   :  { %574 = vmatpush1.bf16.msra.mxu0 %v4731_v23  ;;  %615 = vmatpush1.bf16.msra.mxu1 %v4732_v24  ;;  %v4783_v3 = vld [vmem:[#allocation7 + $0x150] ss:$28 sps:$4 sm:$0xff]   ;;  %v4789_v7 = vld [vmem:[#allocation7 + $0x118] ss:$28 sps:$4 sm:$0xff]   ;;  %v4792_v8 = vld [vmem:[#allocation7 + $0x120] ss:$28 sps:$4 sm:$0xff]  }
  0x7e   :  { %575 = vmatprep.subr.bf16.mxu0 %v4733_v25  ;;  %616 = vmatprep.subr.bf16.mxu1 %v4735_v26  ;;  %v4800_v10 = vld [vmem:[#allocation7 + $0xec] ss:$28 sps:$4 sm:$0xff]   ;;  %v4795_v11 = vld [vmem:[#allocation7 + $0xe0] ss:$28 sps:$4 sm:$0xff]   ;;  %v4806_v14 = vld [vmem:[#allocation7 + $0xb4] ss:$28 sps:$4 sm:$0xff]  }
  0x7f   :  { %v4798_v12 = vld [vmem:[#allocation7 + $0xe8] ss:$28 sps:$4 sm:$0xff]   ;;  %v4804_v16 = vld [vmem:[#allocation7 + $0xb0] ss:$28 sps:$4 sm:$0xff]   ;;  %v4812_v18 = vld [vmem:[#allocation7 + $0x7c] ss:$28 sps:$4 sm:$0xff]  }
  0x80   :  { %v4803_v13 = vld [vmem:[#allocation7 + $0xac] ss:$28 sps:$4 sm:$0xff]   ;;  %v4809_v17 = vld [vmem:[#allocation7 + $0x74] ss:$28 sps:$4 sm:$0xff]   ;;  %v4815_v21 = vld [vmem:[#allocation7 + $0x3c] ss:$28 sps:$4 sm:$0xff]  }
  0x81   :  { %576 = vmatpush1.bf16.msra.mxu0 %v4737_v27  ;;  %617 = vmatpush1.bf16.msra.mxu1 %v4738_v28  ;;  %v4801_v15 = vld [vmem:[#allocation7 + $0xa8] ss:$28 sps:$4 sm:$0xff]   ;;  %v4807_v19 = vld [vmem:[#allocation7 + $0x70] ss:$28 sps:$4 sm:$0xff]   ;;  %v4810_v20 = vld [vmem:[#allocation7 + $0x78] ss:$28 sps:$4 sm:$0xff]  }
  0x82   :  { %577 = vmatprep.subr.bf16.mxu0 %v4739_v29  ;;  %618 = vmatprep.subr.bf16.mxu1 %v4741_v30  ;;  %v4818_v22 = vld [vmem:[#allocation7 + $0x44] ss:$28 sps:$4 sm:$0xff]   ;;  %v4813_v23 = vld [vmem:[#allocation7 + $0x38] ss:$28 sps:$4 sm:$0xff]   ;;  %v4824_v26 = vld [vmem:[#allocation7 + $0xc] ss:$28 sps:$4 sm:$0xff]  }
  0x83   :  { %v4816_v24 = vld [vmem:[#allocation7 + $0x40] ss:$28 sps:$4 sm:$0xff]   ;;  %v4822_v28 = vld [vmem:[#allocation7 + $0x8] ss:$28 sps:$4 sm:$0xff]   ;;  %v144_v29 = vld [vmem:[#allocation2] sm:$0xff]  ;;  %s5559_s6 = smov [#allocation16]  }
  0x84   :  { %v4821_v25 = vld [vmem:[#allocation7 + $0x4] ss:$28 sps:$4 sm:$0xff]   ;;  %v4827_v30 = vld [vmem:[#allocation7 + $0x19c] ss:$28 sps:$4 sm:$0xff]   ;;  %v5671_v33 = vpack.c.bf16 %v144_v29, %v144_v29  ;;  %s4053_s21 = sshll.u32 %s5559_s6, 4  ;;  %s4054_s21 = int_to_ptr.vmem [resolvable:$true] %s4053_s21 }
  0x85   :  { %578 = vmatpush1.bf16.msra.mxu0 %v4743_v31  ;;  %619 = vmatpush1.bf16.msra.mxu1 %v4744_v32  ;;  %v4819_v27 = vld [vmem:[#allocation7] ss:$28 sps:$4 sm:$0xff]   ;;  %v4825_v31 = vld [vmem:[#allocation7 + $0x198] ss:$28 sps:$4 sm:$0xff]   ;;  %s5508_s22 = scalar_lea.vmem %s4054_s21, 128  ;;  %p5513_p13 = scmp.lt.s32.totalorder %s4054_s21, %s4054_s21 }
  0x86   :  { %645 = vmatprep.subr.bf16.mxu0 %v4747_v34  ;;  %4617 = vmatprep.subr.bf16.mxu1 %v5557_v38  ;;  %v4828_v32 = vld [vmem:[#allocation7 + $0x1a0] ss:$28 sps:$4 sm:$0xff]   ;;  %v4913_v29 = vld [vmem:[#allocation10 + $0x1c4] ss:$16 sps:$4 sm:$0xff]   ;;  %p5509_p12 = scmp.ne.s32.totalorder %s4054_s21, %s5508_s22  ;;  %p5514_p0 = scmp.lt.s32.totalorder %s5508_s22, %s5508_s22 }
  0x87   :  { %v4831_v34 = vld [vmem:[#allocation7 + $0x164] ss:$28 sps:$4 sm:$0xff]  }
  0x88   :  { %596 = vmatmul.mubr.bf16.vlgmr.msra.gmra.mxu0 %v5652_v35  ;;  %637 = vmatmul.mubr.bf16.vlgmr.msra.gmra.mxu1 %v5652_v35  ;;  %p5515_p1 = por %p5514_p0, %p5513_p13 }
  0x89   :  { %646 = vmatpush1.bf16.msra.mxu0 %v4745_v36  ;;  %4618 = vmatpush3.bf16.msra.mxu1 %v4748_v37  ;;  %v4832_v36 = vld [vmem:[#allocation7 + $0x168] ss:$28 sps:$4 sm:$0xff]  }
  0x8a   :  { %647 = vmatprep.subr.bf16.mxu0 %v4751_v39  ;;  %4619 = vmatprep.subr.bf16.mxu1 %v5557_v38  ;;  %v4835_v37 = vld [vmem:[#allocation7 + $0x12c] ss:$28 sps:$4 sm:$0xff]   ;;  %p5516_p2 = pnand %p5515_p1, %p5509_p12 }
  0x8b   :  { %677 = vmatprep.mubr.bf16.mxu0 %v5556_v0  ;;  %4633 = vmatprep.mubr.msk.bf16.mxu1 %vm5558_vm0, %v5557_v38  ;;  %v4833_v39 = vld [vmem:[#allocation7 + $0x128] ss:$28 sps:$4 sm:$0xff]  }
  0x8d   :  { %648 = vmatpush1.bf16.msra.mxu0 %v4749_v40  ;;  %4620 = vmatpush3.bf16.msra.mxu1 %v4752_v41  ;;  %v4836_v40 = vld [vmem:[#allocation7 + $0x130] ss:$28 sps:$4 sm:$0xff]  }
  0x8e   :  { %649 = vmatprep.subr.bf16.mxu0 %v4755_v42  ;;  %4621 = vmatprep.subr.bf16.mxu1 %v5557_v38  ;;  %v4839_v41 = vld [vmem:[#allocation7 + $0xf4] ss:$28 sps:$4 sm:$0xff]  }
  0x8f   :  { %v4837_v42 = vld [vmem:[#allocation7 + $0xf0] ss:$28 sps:$4 sm:$0xff]  }
  0x91   :  { %650 = vmatpush1.bf16.msra.mxu0 %v4753_v43  ;;  %4622 = vmatpush3.bf16.msra.mxu1 %v4756_v44  ;;  %v4840_v43 = vld [vmem:[#allocation7 + $0xf8] ss:$28 sps:$4 sm:$0xff]  }
  0x92   :  { %651 = vmatprep.subr.bf16.mxu0 %v4759_v45  ;;  %4623 = vmatprep.subr.bf16.mxu1 %v5557_v38  ;;  %v4843_v44 = vld [vmem:[#allocation7 + $0xbc] ss:$28 sps:$4 sm:$0xff]  }
  0x93   :  { %v4841_v45 = vld [vmem:[#allocation7 + $0xb8] ss:$28 sps:$4 sm:$0xff]  }
  0x95   :  { %652 = vmatpush1.bf16.msra.mxu0 %v4757_v46  ;;  %4624 = vmatpush3.bf16.msra.mxu1 %v4760_v47  ;;  %v4844_v46 = vld [vmem:[#allocation7 + $0xc0] ss:$28 sps:$4 sm:$0xff]  }
  0x96   :  { %653 = vmatprep.subr.bf16.mxu0 %v4763_v48  ;;  %4625 = vmatprep.subr.bf16.mxu1 %v5557_v38  ;;  %v4847_v47 = vld [vmem:[#allocation7 + $0x84] ss:$28 sps:$4 sm:$0xff]  }
  0x97   :  { %v4845_v48 = vld [vmem:[#allocation7 + $0x80] ss:$28 sps:$4 sm:$0xff]  }
  0x99   :  { %654 = vmatpush1.bf16.msra.mxu0 %v4761_v49  ;;  %4626 = vmatpush3.bf16.msra.mxu1 %v4764_v50  ;;  %v4848_v49 = vld [vmem:[#allocation7 + $0x88] ss:$28 sps:$4 sm:$0xff]  }
  0x9a   :  { %655 = vmatprep.subr.bf16.mxu0 %v4767_v51  ;;  %4627 = vmatprep.subr.bf16.mxu1 %v5557_v38  ;;  %v4851_v50 = vld [vmem:[#allocation7 + $0x4c] ss:$28 sps:$4 sm:$0xff]  }
  0x9b   :  { %v4849_v51 = vld [vmem:[#allocation7 + $0x48] ss:$28 sps:$4 sm:$0xff]  }
  0x9d   :  { %656 = vmatpush1.bf16.msra.mxu0 %v4765_v52  ;;  %4628 = vmatpush3.bf16.msra.mxu1 %v4768_v53  ;;  %v4852_v52 = vld [vmem:[#allocation7 + $0x50] ss:$28 sps:$4 sm:$0xff]  }
  0x9e   :  { %657 = vmatprep.subr.bf16.mxu0 %v4771_v54  ;;  %4629 = vmatprep.subr.bf16.mxu1 %v5557_v38  ;;  %v4855_v53 = vld [vmem:[#allocation7 + $0x14] ss:$28 sps:$4 sm:$0xff]  }
  0x9f   :  { %v4853_v54 = vld [vmem:[#allocation7 + $0x10] ss:$28 sps:$4 sm:$0xff]  }
  0xa1   :  { %658 = vmatpush1.bf16.msra.mxu0 %v4769_v55  ;;  %4630 = vmatpush3.bf16.msra.mxu1 %v4772_v56  ;;  %v4856_v55 = vld [vmem:[#allocation7 + $0x18] ss:$28 sps:$4 sm:$0xff]  }
  0xa2   :  { %659 = vmatprep.subr.bf16.mxu0 %v4775_v57  ;;  %4631 = vmatprep.subr.bf16.mxu1 %v5557_v38  ;;  %v4859_v56 = vld [vmem:[#allocation10 + $0xe4] ss:$16 sps:$4 sm:$0xff]  }
  0xa3   :  { %v4862_v57 = vld [vmem:[#allocation10 + $0x2e4] ss:$16 sps:$4 sm:$0xff]  }
  0xa5   :  { %660 = vmatpush1.bf16.msra.mxu0 %v4773_v58  ;;  %4632 = vmatpush3.bf16.msra.mxu1 %v4776_v59  ;;  %v4857_v58 = vld [vmem:[#allocation10 + $0xe0] ss:$16 sps:$4 sm:$0xff]  }
  0xa6   :  { %1014 = vmatprep.subr.bf16.mxu0 %v4779_v60  ;;  %1055 = vmatprep.subr.bf16.mxu1 %v4782_v61  ;;  %v4860_v59 = vld [vmem:[#allocation10 + $0x2e0] ss:$16 sps:$4 sm:$0xff]   ;;  %v4865_v60 = vld [vmem:[#allocation10 + $0xc4] ss:$16 sps:$4 sm:$0xff]  }
  0xa7   :  { %v4868_v61 = vld [vmem:[#allocation10 + $0x2c4] ss:$16 sps:$4 sm:$0xff]  }
  0xa8   :  { %678 = vmatmul.mubr.bf16.vlgmr.msra.gmra.mxu0 %v5652_v35  ;;  %4634 = vmatmul.mubr.bf16.vlgmr.msra.gmra.mxu1 %v5652_v35  ;;  %v4829_v35 = vld [vmem:[#allocation7 + $0x160] ss:$28 sps:$4 sm:$0xff]  }
  0xa9   :  { %1015 = vmatpush1.bf16.msra.mxu0 %v4777_v62  ;;  %1056 = vmatpush1.bf16.msra.mxu1 %v4780_v63  ;;  %v4863_v62 = vld [vmem:[#allocation10 + $0xc0] ss:$16 sps:$4 sm:$0xff]  }
  0xaa   :  { %1016 = vmatprep.subr.bf16.mxu0 %v4785_v1  ;;  %1057 = vmatprep.subr.bf16.mxu1 %v4788_v2  ;;  %v4866_v63 = vld [vmem:[#allocation10 + $0x2c0] ss:$16 sps:$4 sm:$0xff]   ;;  %v4871_v1 = vld [vmem:[#allocation10 + $0xa4] ss:$16 sps:$4 sm:$0xff]  }
  0xab   :  { %1046 = vmatprep.mubr.bf16.mxu0 %v5556_v0  ;;  %1087 = vmatprep.mubr.bf16.mxu1 %v5556_v0  ;;  %v4874_v2 = vld [vmem:[#allocation10 + $0x2a4] ss:$16 sps:$4 sm:$0xff]  }
  0xad   :  { %1017 = vmatpush1.bf16.msra.mxu0 %v4783_v3  ;;  %1058 = vmatpush1.bf16.msra.mxu1 %v4786_v4  ;;  %v4869_v3 = vld [vmem:[#allocation10 + $0xa0] ss:$16 sps:$4 sm:$0xff]  }
  0xae   :  { %1018 = vmatprep.subr.bf16.mxu0 %v4791_v5  ;;  %1059 = vmatprep.subr.bf16.mxu1 %v4794_v6  ;;  %v4872_v4 = vld [vmem:[#allocation10 + $0x2a0] ss:$16 sps:$4 sm:$0xff]   ;;  %v4877_v5 = vld [vmem:[#allocation10 + $0x84] ss:$16 sps:$4 sm:$0xff]  }
  0xaf   :  { %v4880_v6 = vld [vmem:[#allocation10 + $0x284] ss:$16 sps:$4 sm:$0xff]  }
  0xb1   :  { %1019 = vmatpush1.bf16.msra.mxu0 %v4789_v7  ;;  %1060 = vmatpush1.bf16.msra.mxu1 %v4792_v8  ;;  %v4875_v7 = vld [vmem:[#allocation10 + $0x80] ss:$16 sps:$4 sm:$0xff]  }
  0xb2   :  { %1020 = vmatprep.subr.bf16.mxu0 %v4797_v9  ;;  %1061 = vmatprep.subr.bf16.mxu1 %v4800_v10  ;;  %v4878_v8 = vld [vmem:[#allocation10 + $0x280] ss:$16 sps:$4 sm:$0xff]   ;;  %v4883_v9 = vld [vmem:[#allocation10 + $0x64] ss:$16 sps:$4 sm:$0xff]  }
  0xb3   :  { %v4886_v10 = vld [vmem:[#allocation10 + $0x264] ss:$16 sps:$4 sm:$0xff]  }
  0xb5   :  { %1021 = vmatpush1.bf16.msra.mxu0 %v4795_v11  ;;  %1062 = vmatpush1.bf16.msra.mxu1 %v4798_v12  ;;  %v4881_v11 = vld [vmem:[#allocation10 + $0x60] ss:$16 sps:$4 sm:$0xff]  }
  0xb6   :  { %1022 = vmatprep.subr.bf16.mxu0 %v4803_v13  ;;  %1063 = vmatprep.subr.bf16.mxu1 %v4806_v14  ;;  %v4884_v12 = vld [vmem:[#allocation10 + $0x260] ss:$16 sps:$4 sm:$0xff]   ;;  %v4889_v13 = vld [vmem:[#allocation10 + $0x44] ss:$16 sps:$4 sm:$0xff]  }
  0xb7   :  { %v4892_v14 = vld [vmem:[#allocation10 + $0x244] ss:$16 sps:$4 sm:$0xff]  }
  0xb9   :  { %1023 = vmatpush1.bf16.msra.mxu0 %v4801_v15  ;;  %1064 = vmatpush1.bf16.msra.mxu1 %v4804_v16  ;;  %v4887_v15 = vld [vmem:[#allocation10 + $0x40] ss:$16 sps:$4 sm:$0xff]  }
  0xba   :  { %1024 = vmatprep.subr.bf16.mxu0 %v4809_v17  ;;  %1065 = vmatprep.subr.bf16.mxu1 %v4812_v18  ;;  %v4890_v16 = vld [vmem:[#allocation10 + $0x240] ss:$16 sps:$4 sm:$0xff]   ;;  %v4895_v17 = vld [vmem:[#allocation10 + $0x24] ss:$16 sps:$4 sm:$0xff]  }
  0xbb   :  { %v4898_v18 = vld [vmem:[#allocation10 + $0x224] ss:$16 sps:$4 sm:$0xff]  }
  0xbd   :  { %1025 = vmatpush1.bf16.msra.mxu0 %v4807_v19  ;;  %1066 = vmatpush1.bf16.msra.mxu1 %v4810_v20  ;;  %v4893_v19 = vld [vmem:[#allocation10 + $0x20] ss:$16 sps:$4 sm:$0xff]  }
  0xbe   :  { %1026 = vmatprep.subr.bf16.mxu0 %v4815_v21  ;;  %1067 = vmatprep.subr.bf16.mxu1 %v4818_v22  ;;  %v4896_v20 = vld [vmem:[#allocation10 + $0x220] ss:$16 sps:$4 sm:$0xff]   ;;  %v4901_v21 = vld [vmem:[#allocation10 + $0x4] ss:$16 sps:$4 sm:$0xff]  }
  0xbf   :  { %v4904_v22 = vld [vmem:[#allocation10 + $0x204] ss:$16 sps:$4 sm:$0xff]  }
  0xc1   :  { %1027 = vmatpush1.bf16.msra.mxu0 %v4813_v23  ;;  %1068 = vmatpush1.bf16.msra.mxu1 %v4816_v24  ;;  %v4899_v23 = vld [vmem:[#allocation10] ss:$16 sps:$4 sm:$0xff]  }
  0xc2   :  { %1028 = vmatprep.subr.bf16.mxu0 %v4821_v25  ;;  %1069 = vmatprep.subr.bf16.mxu1 %v4824_v26  ;;  %v4902_v24 = vld [vmem:[#allocation10 + $0x200] ss:$16 sps:$4 sm:$0xff]   ;;  %v4907_v25 = vld [vmem:[#allocation10 + $0x1e4] ss:$16 sps:$4 sm:$0xff]  }
  0xc3   :  { %v4910_v26 = vld [vmem:[#allocation10 + $0x3e4] ss:$16 sps:$4 sm:$0xff]  }
  0xc5   :  { %1029 = vmatpush1.bf16.msra.mxu0 %v4819_v27  ;;  %1070 = vmatpush1.bf16.msra.mxu1 %v4822_v28  ;;  %v4905_v27 = vld [vmem:[#allocation10 + $0x1e0] ss:$16 sps:$4 sm:$0xff]  }
  0xc6   :  { %1096 = vmatprep.subr.bf16.mxu0 %v4827_v30  ;;  %4637 = vmatprep.subr.bf16.mxu1 %v5557_v38  ;;  %v4908_v28 = vld [vmem:[#allocation10 + $0x3e0] ss:$16 sps:$4 sm:$0xff]   ;;  %v4916_v30 = vld [vmem:[#allocation10 + $0x3c4] ss:$16 sps:$4 sm:$0xff]  }
  0xc8   :  { %1047 = vmatmul.mubr.bf16.vlgmr.msra.gmra.mxu0 %v5671_v33  ;;  %1088 = vmatmul.mubr.bf16.vlgmr.msra.gmra.mxu1 %v5671_v33 }
  0xc9   :  { %1097 = vmatpush1.bf16.msra.mxu0 %v4825_v31  ;;  %4638 = vmatpush3.bf16.msra.mxu1 %v4828_v32  ;;  %v4911_v31 = vld [vmem:[#allocation10 + $0x1c0] ss:$16 sps:$4 sm:$0xff]  }
  0xca   :  { %1098 = vmatprep.subr.bf16.mxu0 %v4831_v34  ;;  %4639 = vmatprep.subr.bf16.mxu1 %v5557_v38  ;;  %v4914_v32 = vld [vmem:[#allocation10 + $0x3c0] ss:$16 sps:$4 sm:$0xff]   ;;  %v4922_v34 = vld [vmem:[#allocation10 + $0x3a4] ss:$16 sps:$4 sm:$0xff]  }
  0xcb   :  { %1128 = vmatprep.mubr.bf16.mxu0 %v5556_v0  ;;  %4653 = vmatprep.mubr.msk.bf16.mxu1 %vm5558_vm0, %v5557_v38 }
  0xcd   :  { %1099 = vmatpush1.bf16.msra.mxu0 %v4829_v35  ;;  %4640 = vmatpush3.bf16.msra.mxu1 %v4832_v36  ;;  %v4917_v35 = vld [vmem:[#allocation10 + $0x1a0] ss:$16 sps:$4 sm:$0xff]  }
  0xce   :  { %1100 = vmatprep.subr.bf16.mxu0 %v4835_v37  ;;  %4641 = vmatprep.subr.bf16.mxu1 %v5557_v38  ;;  %v4920_v36 = vld [vmem:[#allocation10 + $0x3a0] ss:$16 sps:$4 sm:$0xff]   ;;  %v4925_v37 = vld [vmem:[#allocation10 + $0x184] ss:$16 sps:$4 sm:$0xff]  }
  0xd1   :  { %1101 = vmatpush1.bf16.msra.mxu0 %v4833_v39  ;;  %4642 = vmatpush3.bf16.msra.mxu1 %v4836_v40  ;;  %v4928_v39 = vld [vmem:[#allocation10 + $0x384] ss:$16 sps:$4 sm:$0xff]   ;;  %v4923_v40 = vld [vmem:[#allocation10 + $0x180] ss:$16 sps:$4 sm:$0xff]  }
  0xd2   :  { %1102 = vmatprep.subr.bf16.mxu0 %v4839_v41  ;;  %4643 = vmatprep.subr.bf16.mxu1 %v5557_v38  ;;  %v4926_v41 = vld [vmem:[#allocation10 + $0x380] ss:$16 sps:$4 sm:$0xff]  }
  0xd5   :  { %1103 = vmatpush1.bf16.msra.mxu0 %v4837_v42  ;;  %4644 = vmatpush3.bf16.msra.mxu1 %v4840_v43  ;;  %v4931_v42 = vld [vmem:[#allocation10 + $0x164] ss:$16 sps:$4 sm:$0xff]  }
  0xd6   :  { %1104 = vmatprep.subr.bf16.mxu0 %v4843_v44  ;;  %4645 = vmatprep.subr.bf16.mxu1 %v5557_v38  ;;  %v4934_v43 = vld [vmem:[#allocation10 + $0x364] ss:$16 sps:$4 sm:$0xff]   ;;  %v4929_v44 = vld [vmem:[#allocation10 + $0x160] ss:$16 sps:$4 sm:$0xff]  }
  0xd9   :  { %1105 = vmatpush1.bf16.msra.mxu0 %v4841_v45  ;;  %4646 = vmatpush3.bf16.msra.mxu1 %v4844_v46  ;;  %v4932_v45 = vld [vmem:[#allocation10 + $0x360] ss:$16 sps:$4 sm:$0xff]   ;;  %v4937_v46 = vld [vmem:[#allocation10 + $0x144] ss:$16 sps:$4 sm:$0xff]  }
  0xda   :  { %1106 = vmatprep.subr.bf16.mxu0 %v4847_v47  ;;  %4647 = vmatprep.subr.bf16.mxu1 %v5557_v38  ;;  %v4940_v47 = vld [vmem:[#allocation10 + $0x344] ss:$16 sps:$4 sm:$0xff]  }
  0xdd   :  { %1107 = vmatpush1.bf16.msra.mxu0 %v4845_v48  ;;  %4648 = vmatpush3.bf16.msra.mxu1 %v4848_v49  ;;  %v4935_v48 = vld [vmem:[#allocation10 + $0x140] ss:$16 sps:$4 sm:$0xff]  }
  0xde   :  { %1108 = vmatprep.subr.bf16.mxu0 %v4851_v50  ;;  %4649 = vmatprep.subr.bf16.mxu1 %v5557_v38  ;;  %v4938_v49 = vld [vmem:[#allocation10 + $0x340] ss:$16 sps:$4 sm:$0xff]   ;;  %v4943_v50 = vld [vmem:[#allocation10 + $0x124] ss:$16 sps:$4 sm:$0xff]  }
  0xe1   :  { %1109 = vmatpush1.bf16.msra.mxu0 %v4849_v51  ;;  %4650 = vmatpush3.bf16.msra.mxu1 %v4852_v52  ;;  %v4946_v51 = vld [vmem:[#allocation10 + $0x324] ss:$16 sps:$4 sm:$0xff]   ;;  %v4941_v52 = vld [vmem:[#allocation10 + $0x120] ss:$16 sps:$4 sm:$0xff]  }
  0xe2   :  { %1110 = vmatprep.subr.bf16.mxu0 %v4855_v53  ;;  %4651 = vmatprep.subr.bf16.mxu1 %v5557_v38  ;;  %v4944_v53 = vld [vmem:[#allocation10 + $0x320] ss:$16 sps:$4 sm:$0xff]  }
  0xe5   :  { %1111 = vmatpush1.bf16.msra.mxu0 %v4853_v54  ;;  %4652 = vmatpush3.bf16.msra.mxu1 %v4856_v55  ;;  %v4949_v54 = vld [vmem:[#allocation10 + $0x104] ss:$16 sps:$4 sm:$0xff]  }
  0xe6   :  { %2601 = vmatprep.subr.bf16.mxu0 %v4859_v56  ;;  %2642 = vmatprep.subr.bf16.mxu1 %v4862_v57  ;;  %v4952_v55 = vld [vmem:[#allocation10 + $0x304] ss:$16 sps:$4 sm:$0xff]   ;;  %v4947_v56 = vld [vmem:[#allocation10 + $0x100] ss:$16 sps:$4 sm:$0xff]  }
  0xe7   :  { %v4950_v57 = vld [vmem:[#allocation10 + $0x300] ss:$16 sps:$4 sm:$0xff]  }
  0xe8   :  { %1129 = vmatmul.mubr.bf16.vlgmr.msra.gmra.mxu0 %v5671_v33  ;;  %4654 = vmatmul.mubr.bf16.vlgmr.msra.gmra.mxu1 %v5671_v33  ;;  %v4919_v33 = vld [vmem:[#allocation10 + $0x1a4] ss:$16 sps:$4 sm:$0xff]  }
  0xe9   :  { %2602 = vmatpush1.bf16.msra.mxu0 %v4857_v58  ;;  %2643 = vmatpush1.bf16.msra.mxu1 %v4860_v59  ;;  %v1179_v58 = vlaneseq  ;;  %v4955_v59 = vld [vmem:[#allocation10 + $0x4e4] ss:$16 sps:$4 sm:$0xff]  }
  0xea   :  { %2603 = vmatprep.subr.bf16.mxu0 %v4865_v60  ;;  %2644 = vmatprep.subr.bf16.mxu1 %v4868_v61  ;;  %v4958_v60 = vld [vmem:[#allocation10 + $0x6e4] ss:$16 sps:$4 sm:$0xff]  }
  0xeb   :  { %v5688_v61 = vshrl.u32 %v1179_v58, 7  ;;  %v4970_v58 = vld [vmem:[#allocation10 + $0x6a4] ss:$16 sps:$4 sm:$0xff]  }
  0xed   :  { %2604 = vmatpush1.bf16.msra.mxu0 %v4863_v62  ;;  %2645 = vmatpush1.bf16.msra.mxu1 %v4866_v63  ;;  %v5693_v62 = vld [vmem:[%s5814_s4] sm:$0xff]  ;;  %v1197_v63 = vsub.s32 4, %v5688_v61 }
  0xee   :  { %2605 = vmatprep.subr.bf16.mxu0 %v4871_v1  ;;  %2646 = vmatprep.subr.bf16.mxu1 %v4874_v2 }
  0xef   :  { %v5697_v1 = vrot.slane %v5693_v62, %v1197_v63  ;;  %v4973_v63 = vld [vmem:[#allocation10 + $0x484] ss:$16 sps:$4 sm:$0xff]  }
  0xf1   :  { %2606 = vmatpush1.bf16.msra.mxu0 %v4869_v3  ;;  %2647 = vmatpush1.bf16.msra.mxu1 %v4872_v4 }
  0xf2   :  { %2607 = vmatprep.subr.bf16.mxu0 %v4877_v5  ;;  %2648 = vmatprep.subr.bf16.mxu1 %v4880_v6 }
  0xf5   :  { %2608 = vmatpush1.bf16.msra.mxu0 %v4875_v7  ;;  %2649 = vmatpush1.bf16.msra.mxu1 %v4878_v8 }
  0xf6   :  { %2609 = vmatprep.subr.bf16.mxu0 %v4883_v9  ;;  %2650 = vmatprep.subr.bf16.mxu1 %v4886_v10 }
  0xf9   :  { %2610 = vmatpush1.bf16.msra.mxu0 %v4881_v11  ;;  %2651 = vmatpush1.bf16.msra.mxu1 %v4884_v12 }
  0xfa   :  { %2611 = vmatprep.subr.bf16.mxu0 %v4889_v13  ;;  %2652 = vmatprep.subr.bf16.mxu1 %v4892_v14 }
  0xfd   :  { %2612 = vmatpush1.bf16.msra.mxu0 %v4887_v15  ;;  %2653 = vmatpush1.bf16.msra.mxu1 %v4890_v16 }
  0xfe   :  { %2613 = vmatprep.subr.bf16.mxu0 %v4895_v17  ;;  %2654 = vmatprep.subr.bf16.mxu1 %v4898_v18  ;;  %v5706_v18 = vsub.s32 0, %v5688_v61 }
 0x101   :  { %2614 = vmatpush1.bf16.msra.mxu0 %v4893_v19  ;;  %2655 = vmatpush1.bf16.msra.mxu1 %v4896_v20  ;;  %v5709_v19 = vsub.s32 2, %v5688_v61  ;;  %v5712_v20 = vsub.s32 1, %v5688_v61 }
 0x102   :  { %2615 = vmatprep.subr.bf16.mxu0 %v4901_v21  ;;  %2656 = vmatprep.subr.bf16.mxu1 %v4904_v22  ;;  %v1193_v21 = vsub.s32 3, %v5688_v61  ;;  %v1182_v22 = vrot.slane %v5693_v62, %v5706_v18 }
 0x105   :  { %2616 = vmatpush1.bf16.msra.mxu0 %v4899_v23  ;;  %2657 = vmatpush1.bf16.msra.mxu1 %v4902_v24  ;;  %v1190_v23 = vrot.slane %v5693_v62, %v5709_v19 }
 0x106   :  { %2617 = vmatprep.subr.bf16.mxu0 %v4907_v25  ;;  %2658 = vmatprep.subr.bf16.mxu1 %v4910_v26 }
 0x109   :  { %2618 = vmatpush2.bf16.msra.mxu0 %v4905_v27  ;;  %2659 = vmatpush2.bf16.msra.mxu1 %v4908_v28  ;;  %v1186_v28 = vrot.slane %v5693_v62, %v5712_v20 }
 0x10a   :  { %2619 = vmatprep.subr.bf16.mxu0 %v4913_v29  ;;  %2660 = vmatprep.subr.bf16.mxu1 %v4916_v30  ;;  %v1194_v29 = vrot.slane %v5693_v62, %v1193_v21 }
 0x10d   :  { %2620 = vmatpush2.bf16.msra.mxu0 %v4911_v31  ;;  %2661 = vmatpush2.bf16.msra.mxu1 %v4914_v32 }
 0x10e   :  { %2621 = vmatprep.subr.bf16.mxu0 %v4919_v33  ;;  %2662 = vmatprep.subr.bf16.mxu1 %v4922_v34 }
 0x111   :  { %2622 = vmatpush2.bf16.msra.mxu0 %v4917_v35  ;;  %2663 = vmatpush2.bf16.msra.mxu1 %v4920_v36 }
 0x112   :  { %2623 = vmatprep.subr.bf16.mxu0 %v4925_v37  ;;  %2664 = vmatprep.subr.bf16.mxu1 %v4928_v39 }
 0x115   :  { %2624 = vmatpush2.bf16.msra.mxu0 %v4923_v40  ;;  %2665 = vmatpush2.bf16.msra.mxu1 %v4926_v41 }
 0x116   :  { %2625 = vmatprep.subr.bf16.mxu0 %v4931_v42  ;;  %2666 = vmatprep.subr.bf16.mxu1 %v4934_v43 }
 0x119   :  { %2626 = vmatpush2.bf16.msra.mxu0 %v4929_v44  ;;  %2667 = vmatpush2.bf16.msra.mxu1 %v4932_v45 }
 0x11a   :  { %2627 = vmatprep.subr.bf16.mxu0 %v4937_v46  ;;  %2668 = vmatprep.subr.bf16.mxu1 %v4940_v47 }
 0x11d   :  { %2628 = vmatpush2.bf16.msra.mxu0 %v4935_v48  ;;  %2669 = vmatpush2.bf16.msra.mxu1 %v4938_v49  ;;  %v4953_v49 = vld [vmem:[#allocation10 + $0x4e0] ss:$16 sps:$4 sm:$0xff]  }
 0x11e   :  { %2629 = vmatprep.subr.bf16.mxu0 %v4943_v50  ;;  %2670 = vmatprep.subr.bf16.mxu1 %v4946_v51  ;;  %v4956_v50 = vld [vmem:[#allocation10 + $0x6e0] ss:$16 sps:$4 sm:$0xff]  }
 0x121   :  { %2630 = vmatpush2.bf16.msra.mxu0 %v4941_v52  ;;  %2671 = vmatpush2.bf16.msra.mxu1 %v4944_v53  ;;  %v4961_v53 = vld [vmem:[#allocation10 + $0x4c4] ss:$16 sps:$4 sm:$0xff]  }
 0x122   :  { %2631 = vmatprep.subr.bf16.mxu0 %v4949_v54  ;;  %2672 = vmatprep.subr.bf16.mxu1 %v4952_v55  ;;  %v4964_v54 = vld [vmem:[#allocation10 + $0x6c4] ss:$16 sps:$4 sm:$0xff]   ;;  %v4959_v55 = vld [vmem:[#allocation10 + $0x4c0] ss:$16 sps:$4 sm:$0xff]  }
 0x125   :  { %2632 = vmatpush2.bf16.msra.mxu0 %v4947_v56  ;;  %2673 = vmatpush2.bf16.msra.mxu1 %v4950_v57  ;;  %v4962_v56 = vld [vmem:[#allocation10 + $0x6c0] ss:$16 sps:$4 sm:$0xff]   ;;  %v4967_v57 = vld [vmem:[#allocation10 + $0x4a4] ss:$16 sps:$4 sm:$0xff]  }
 0x126   :  { %2683 = vmatprep.subr.bf16.mxu0 %v4955_v59  ;;  %2724 = vmatprep.subr.bf16.mxu1 %v4958_v60  ;;  %v4965_v59 = vld [vmem:[#allocation10 + $0x4a0] ss:$16 sps:$4 sm:$0xff]  }
 0x127   :  { %v4968_v60 = vld [vmem:[#allocation10 + $0x6a0] ss:$16 sps:$4 sm:$0xff]  }
 0x148   :  { %v597_v2 = vpop.f32.mrf.mxu0  ;;  %v638_v3 = vpop.f32.mrf.mxu1 }
 0x14a   :  { %v599_v4 = vpop.f32.mrf.mxu0  ;;  %v640_v5 = vpop.f32.mrf.mxu1 }
 0x14c   :  { %v601_v6 = vpop.f32.mrf.mxu0  ;;  %v642_v7 = vpop.f32.mrf.mxu1 }
 0x14d   :  { %v4982_v6 = vld [vmem:[#allocation10 + $0x664] ss:$16 sps:$4 sm:$0xff]   ;;  %v4977_v7 = vld [vmem:[#allocation10 + $0x460] ss:$16 sps:$4 sm:$0xff]  }
 0x14e   :  { %v602_v8 = vpop.f32.mrf.mxu0  ;;  %v643_v9 = vpop.f32.mrf.mxu1 }
 0x14f   :  { %v4980_v8 = vld [vmem:[#allocation10 + $0x660] ss:$16 sps:$4 sm:$0xff]   ;;  %v4985_v9 = vld [vmem:[#allocation10 + $0x444] ss:$16 sps:$4 sm:$0xff]  }
 0x168   :  { %v5699_v10 = vpop.f32.mrf.mxu0  ;;  %v5701_v11 = vpop.f32.mrf.mxu1 }
 0x16a   :  { %v5703_v12 = vpop.f32.mrf.mxu0  ;;  %v4635_v13 = vpop.f32.mrf.mxu1 }
 0x16b   :  { %v4988_v13 = vld [vmem:[#allocation10 + $0x644] ss:$16 sps:$4 sm:$0xff]  }
 0x16c   :  { %v683_v14 = vpop.f32.mrf.mxu0  ;;  %v723_v15 = vpop.f32.mrf.mxu1 }
 0x16d   :  { %v1205_v14 = vsub.s32 6, %v5688_v61  ;;  %v4983_v15 = vld [vmem:[#allocation10 + $0x440] ss:$16 sps:$4 sm:$0xff]  }
 0x16e   :  { %v684_v16 = vpop.f32.mrf.mxu0  ;;  %v4636_v17 = vpop.f32.mrf.mxu1 }
 0x16f   :  { %v4986_v16 = vld [vmem:[#allocation10 + $0x640] ss:$16 sps:$4 sm:$0xff]   ;;  %v1201_v17 = vsub.s32 5, %v5688_v61 }
 0x188   :  { %v1048_v24 = vpop.f32.mrf.mxu0  ;;  %v1089_v25 = vpop.f32.mrf.mxu1 }
 0x189   :  { %v1049_v26 = vadd.f32 %v1048_v24, %v597_v2  ;;  %v1090_v27 = vadd.f32 %v1089_v25, %v638_v3  ;;  %v4976_v2 = vld [vmem:[#allocation10 + $0x684] ss:$16 sps:$4 sm:$0xff]   ;;  %v4971_v3 = vld [vmem:[#allocation10 + $0x480] ss:$16 sps:$4 sm:$0xff]   ;;  %v1206_v24 = vrot.slane %v5693_v62, %v1205_v14 }
 0x18a   :  { %v1050_v30 = vpop.f32.mrf.mxu0  ;;  %v1091_v31 = vpop.f32.mrf.mxu1  ;;  %v5031_v14 = vld [vmem:[#allocation10 + $0x540] ss:$16 sps:$4 sm:$0xff]  }
 0x18b   :  { %v1214_v32 = vadd.f32 %v1182_v22, %v1049_v26  ;;  %v1216_v33 = vadd.f32 %v1190_v23, %v1090_v27  ;;  %v1051_v34 = vadd.f32 %v1050_v30, %v599_v4  ;;  %v1092_v35 = vadd.f32 %v1091_v31, %v640_v5  ;;  %v4974_v4 = vld [vmem:[#allocation10 + $0x680] ss:$16 sps:$4 sm:$0xff]   ;;  %v4979_v5 = vld [vmem:[#allocation10 + $0x464] ss:$16 sps:$4 sm:$0xff]  }
 0x18c   :  { %v1052_v36 = vpop.f32.mrf.mxu0  ;;  %v1093_v37 = vpop.f32.mrf.mxu1  ;;  %v4991_v22 = vld [vmem:[#allocation10 + $0x424] ss:$16 sps:$4 sm:$0xff]   ;;  %v4989_v30 = vld [vmem:[#allocation10 + $0x420] ss:$16 sps:$4 sm:$0xff]  }
 0x18d   :  { %v1215_v39 = vadd.f32 %v1186_v28, %v1051_v34  ;;  %v1217_v40 = vadd.f32 %v1194_v29, %v1092_v35  ;;  %v1221_v41 = vmax.f32 %v1214_v32, 0.0  ;;  %v1223_v42 = vmax.f32 %v1216_v33, 0.0  ;;  %v4994_v23 = vld [vmem:[#allocation10 + $0x624] ss:$16 sps:$4 sm:$0xff]   ;;  %v4992_v31 = vld [vmem:[#allocation10 + $0x620] ss:$16 sps:$4 sm:$0xff]  }
 0x18e   :  { %v1053_v43 = vpop.f32.mrf.mxu0  ;;  %v1094_v44 = vpop.f32.mrf.mxu1  ;;  %v1202_v29 = vrot.slane %v5693_v62, %v1201_v17  ;;  %v4997_v34 = vld [vmem:[#allocation10 + $0x404] ss:$16 sps:$4 sm:$0xff]   ;;  %v4995_v62 = vld [vmem:[#allocation10 + $0x400] ss:$16 sps:$4 sm:$0xff]   ;;  %v5042_v17 = vld [vmem:[#allocation10 + $0x2c] ss:$16 sps:$4 sm:$0xff]  }
 0x18f   :  { %v1222_v45 = vmax.f32 %v1215_v39, 0.0  ;;  %v1224_v46 = vmax.f32 %v1217_v40, 0.0  ;;  %v5728_v51 = vpack.c.bf16 %v1221_v41, %v1221_v41  ;;  %v5730_v52 = vpack.c.bf16 %v1223_v42, %v1223_v42  ;;  %v5000_v35 = vld [vmem:[#allocation10 + $0x604] ss:$16 sps:$4 sm:$0xff]   ;;  %v4998_v41 = vld [vmem:[#allocation10 + $0x600] ss:$16 sps:$4 sm:$0xff]  }
 0x190   :  { %v5003_v44 = vld [vmem:[#allocation10 + $0x5e4] ss:$16 sps:$4 sm:$0xff]  }
 0x191   :  { %v5724_v47 = vpack.c.bf16 %v1222_v45, %v1222_v45  ;;  %v5726_v48 = vpack.c.bf16 %v1224_v46, %v1224_v46  ;;  %v5006_v45 = vld [vmem:[#allocation10 + $0xec] ss:$16 sps:$4 sm:$0xff]  }
 0x193   :  { %2633 = vmatprep.mubr.bf16.mxu0 %v5724_v47  ;;  %2674 = vmatprep.mubr.bf16.mxu1 %v5726_v48 }
 0x194   :  { %2634 = vmatmul.mubr.bf16.vlgmr.msra.gmra.mxu0 %v5728_v51  ;;  %2675 = vmatmul.mubr.bf16.vlgmr.msra.gmra.mxu1 %v5730_v52 }
 0x195   :  { %2684 = vmatpush1.bf16.msra.mxu0 %v4953_v49  ;;  %2725 = vmatpush1.bf16.msra.mxu1 %v4956_v50  ;;  %v5004_v50 = vld [vmem:[#allocation10 + $0xe8] ss:$16 sps:$4 sm:$0xff]  }
 0x196   :  { %2685 = vmatprep.subr.bf16.mxu0 %v4961_v53  ;;  %2726 = vmatprep.subr.bf16.mxu1 %v4964_v54  ;;  %v5009_v54 = vld [vmem:[#allocation10 + $0x5c4] ss:$16 sps:$4 sm:$0xff]  }
 0x197   :  { %2756 = vmatprep.mubr.bf16.mxu1 %v5556_v0 }
 0x199   :  { %2686 = vmatpush1.bf16.msra.mxu0 %v4959_v55  ;;  %2727 = vmatpush1.bf16.msra.mxu1 %v4962_v56  ;;  %v5012_v55 = vld [vmem:[#allocation10 + $0xcc] ss:$16 sps:$4 sm:$0xff]   ;;  %v5007_v56 = vld [vmem:[#allocation10 + $0x5c0] ss:$16 sps:$4 sm:$0xff]  }
 0x19a   :  { %2687 = vmatprep.subr.bf16.mxu0 %v4967_v57  ;;  %2728 = vmatprep.subr.bf16.mxu1 %v4970_v58  ;;  %v5010_v57 = vld [vmem:[#allocation10 + $0xc8] ss:$16 sps:$4 sm:$0xff]   ;;  %v5015_v58 = vld [vmem:[#allocation10 + $0x5a4] ss:$16 sps:$4 sm:$0xff]  }
 0x19d   :  { %2688 = vmatpush1.bf16.msra.mxu0 %v4965_v59  ;;  %2729 = vmatpush1.bf16.msra.mxu1 %v4968_v60  ;;  %v5018_v59 = vld [vmem:[#allocation10 + $0xac] ss:$16 sps:$4 sm:$0xff]   ;;  %v5013_v60 = vld [vmem:[#allocation10 + $0x5a0] ss:$16 sps:$4 sm:$0xff]  }
 0x19e   :  { %2689 = vmatprep.subr.bf16.mxu0 %v4973_v63  ;;  %2730 = vmatprep.subr.bf16.mxu1 %v4976_v2  ;;  %v5016_v63 = vld [vmem:[#allocation10 + $0xa8] ss:$16 sps:$4 sm:$0xff]   ;;  %v5021_v2 = vld [vmem:[#allocation10 + $0x584] ss:$16 sps:$4 sm:$0xff]  }
 0x1a1   :  { %2690 = vmatpush1.bf16.msra.mxu0 %v4971_v3  ;;  %2731 = vmatpush1.bf16.msra.mxu1 %v4974_v4  ;;  %v5024_v3 = vld [vmem:[#allocation10 + $0x8c] ss:$16 sps:$4 sm:$0xff]   ;;  %v5019_v4 = vld [vmem:[#allocation10 + $0x580] ss:$16 sps:$4 sm:$0xff]  }
 0x1a2   :  { %2691 = vmatprep.subr.bf16.mxu0 %v4979_v5  ;;  %2732 = vmatprep.subr.bf16.mxu1 %v4982_v6  ;;  %v5022_v5 = vld [vmem:[#allocation10 + $0x88] ss:$16 sps:$4 sm:$0xff]   ;;  %v5027_v6 = vld [vmem:[#allocation10 + $0x564] ss:$16 sps:$4 sm:$0xff]  }
 0x1a5   :  { %2692 = vmatpush1.bf16.msra.mxu0 %v4977_v7  ;;  %2733 = vmatpush1.bf16.msra.mxu1 %v4980_v8  ;;  %v5025_v7 = vld [vmem:[#allocation10 + $0x560] ss:$16 sps:$4 sm:$0xff]   ;;  %v5028_v8 = vld [vmem:[#allocation10 + $0x68] ss:$16 sps:$4 sm:$0xff]  }
 0x1a6   :  { %2693 = vmatprep.subr.bf16.mxu0 %v4985_v9  ;;  %2734 = vmatprep.subr.bf16.mxu1 %v4988_v13  ;;  %v5033_v9 = vld [vmem:[#allocation10 + $0x544] ss:$16 sps:$4 sm:$0xff]   ;;  %v5036_v13 = vld [vmem:[#allocation10 + $0x4c] ss:$16 sps:$4 sm:$0xff]  }
 0x1a8   :  { %v1130_v25 = vpop.f32.mrf.mxu0  ;;  %v1171_v26 = vpop.f32.mrf.mxu1 }
 0x1a9   :  { %v1131_v27 = vadd.f32 %v1130_v25, %v5699_v10  ;;  %v1172_v28 = vadd.f32 %v1171_v26, %v5701_v11  ;;  %2694 = vmatpush1.bf16.msra.mxu0 %v4983_v15  ;;  %2735 = vmatpush1.bf16.msra.mxu1 %v4986_v16  ;;  %v5034_v15 = vld [vmem:[#allocation10 + $0x48] ss:$16 sps:$4 sm:$0xff]   ;;  %v5039_v16 = vld [vmem:[#allocation10 + $0x524] ss:$16 sps:$4 sm:$0xff]   ;;  %v5048_v25 = vld [vmem:[#allocation10 + $0xc] ss:$16 sps:$4 sm:$0xff]  }
 0x1aa   :  { %v1132_v32 = vpop.f32.mrf.mxu0  ;;  %v4655_v33 = vpop.f32.mrf.mxu1  ;;  %2695 = vmatprep.subr.bf16.mxu0 %v4991_v22  ;;  %2736 = vmatprep.subr.bf16.mxu1 %v4994_v23  ;;  %v5037_v22 = vld [vmem:[#allocation10 + $0x520] ss:$16 sps:$4 sm:$0xff]   ;;  %v5040_v23 = vld [vmem:[#allocation10 + $0x28] ss:$16 sps:$4 sm:$0xff]  }
 0x1ab   :  { %v5744_v36 = vadd.f32 %v5697_v1, %v1131_v27  ;;  %v1220_v37 = vadd.f32 %v1206_v24, %v1172_v28  ;;  %v1133_v10 = vadd.f32 %v1132_v32, %v5703_v12  ;;  %v5001_v12 = vld [vmem:[#allocation10 + $0x5e0] ss:$16 sps:$4 sm:$0xff]   ;;  %v5045_v24 = vld [vmem:[#allocation10 + $0x504] ss:$16 sps:$4 sm:$0xff]   ;;  %v5046_v27 = vld [vmem:[#allocation10 + $0x8] ss:$16 sps:$4 sm:$0xff]  }
 0x1ac   :  { %v1174_v39 = vpop.f32.mrf.mxu1  ;;  %v1134_v11 = vpop.f32.mrf.mxu0  ;;  %v5043_v26 = vld [vmem:[#allocation10 + $0x500] ss:$16 sps:$4 sm:$0xff]   ;;  %v5052_v32 = vld [vmem:[#allocation10 + $0x2e8] ss:$16 sps:$4 sm:$0xff]  }
 0x1ad   :  { %v1219_v40 = vadd.f32 %v1202_v29, %v1133_v10  ;;  %2696 = vmatpush1.bf16.msra.mxu0 %v4989_v30  ;;  %2737 = vmatpush1.bf16.msra.mxu1 %v4992_v31  ;;  %v1227_v42 = vmax.f32 %v1220_v37, 0.0  ;;  %v1225_v28 = vmax.f32 %v5744_v36, 0.0  ;;  %v5051_v29 = vld [vmem:[#allocation10 + $0x1ec] ss:$16 sps:$4 sm:$0xff]   ;;  %v5049_v31 = vld [vmem:[#allocation10 + $0x1e8] ss:$16 sps:$4 sm:$0xff]  }
 0x1ae   :  { %v4656_v43 = vpop.f32.mrf.mxu1  ;;  %2697 = vmatprep.subr.bf16.mxu0 %v4997_v34  ;;  %2738 = vmatprep.subr.bf16.mxu1 %v5000_v35  ;;  %v1135_v46 = vpop.f32.mrf.mxu0  ;;  %v5054_v30 = vld [vmem:[#allocation10 + $0x2ec] ss:$16 sps:$4 sm:$0xff]   ;;  %v5055_v37 = vld [vmem:[#allocation10 + $0x1c8] ss:$16 sps:$4 sm:$0xff]  }
 0x1af   :  { %v1226_v49 = vmax.f32 %v1219_v40, 0.0  ;;  %v5749_v53 = vpack.c.bf16 %v1227_v42, %v1227_v42  ;;  %v5755_v33 = vpack.c.bf16 %v1225_v28, %v1225_v28  ;;  %v5057_v34 = vld [vmem:[#allocation10 + $0x1cc] ss:$16 sps:$4 sm:$0xff]   ;;  %v5058_v36 = vld [vmem:[#allocation10 + $0x2c8] ss:$16 sps:$4 sm:$0xff]  }
 0x1b0   :  { %v5060_v35 = vld [vmem:[#allocation10 + $0x2cc] ss:$16 sps:$4 sm:$0xff]   ;;  %v5061_v11 = vld [vmem:[#allocation10 + $0x1a8] ss:$16 sps:$4 sm:$0xff]  }
 0x1b1   :  { %v5747_v1 = vpack.c.bf16 %v1226_v49, %v1226_v49  ;;  %2698 = vmatpush1.bf16.msra.mxu0 %v4995_v62  ;;  %2739 = vmatpush1.bf16.msra.mxu1 %v4998_v41  ;;  %v5063_v10 = vld [vmem:[#allocation10 + $0x1ac] ss:$16 sps:$4 sm:$0xff]   ;;  %v5064_v40 = vld [vmem:[#allocation10 + $0x2a8] ss:$16 sps:$4 sm:$0xff]  }
 0x1b2   :  { %2699 = vmatprep.subr.bf16.mxu0 %v5003_v44  ;;  %2765 = vmatprep.subr.bf16.mxu1 %v5006_v45  ;;  %v5066_v39 = vld [vmem:[#allocation10 + $0x2ac] ss:$16 sps:$4 sm:$0xff]   ;;  %v5067_v42 = vld [vmem:[#allocation10 + $0x188] ss:$16 sps:$4 sm:$0xff]  }
 0x1b3   :  { %2715 = vmatprep.mubr.bf16.mxu0 %v5747_v1  ;;  %v5069_v62 = vld [vmem:[#allocation10 + $0x18c] ss:$16 sps:$4 sm:$0xff]   ;;  %v5070_v43 = vld [vmem:[#allocation10 + $0x288] ss:$16 sps:$4 sm:$0xff]  }
 0x1b4   :  { %2757 = vmatmul.mubr.bf16.vlgmr.msra.gmra.mxu1 %v5749_v53  ;;  %v5072_v41 = vld [vmem:[#allocation10 + $0x28c] ss:$16 sps:$4 sm:$0xff]   ;;  %v5073_v45 = vld [vmem:[#allocation10 + $0x168] ss:$16 sps:$4 sm:$0xff]  }
 0x1b5   :  { %2700 = vmatpush2.bf16.msra.mxu0 %v5001_v12  ;;  %2766 = vmatpush1.bf16.msra.mxu1 %v5004_v50  ;;  %v5075_v44 = vld [vmem:[#allocation10 + $0x16c] ss:$16 sps:$4 sm:$0xff]   ;;  %v5076_v46 = vld [vmem:[#allocation10 + $0x268] ss:$16 sps:$4 sm:$0xff]  }
 0x1b6   :  { %2797 = vmatprep.mubr.bf16.mxu1 %v5724_v47  ;;  %2701 = vmatprep.subr.bf16.mxu0 %v5009_v54  ;;  %v5030_v47 = vld [vmem:[#allocation10 + $0x6c] ss:$16 sps:$4 sm:$0xff]   ;;  %v5079_v50 = vld [vmem:[#allocation10 + $0x148] ss:$16 sps:$4 sm:$0xff]  }
 0x1b7   :  { %2767 = vmatprep.subr.bf16.mxu1 %v5012_v55  ;;  %v5081_v49 = vld [vmem:[#allocation10 + $0x14c] ss:$16 sps:$4 sm:$0xff]   ;;  %v5082_v54 = vld [vmem:[#allocation10 + $0x248] ss:$16 sps:$4 sm:$0xff]  }
 0x1b8   :  { %v5084_v12 = vld [vmem:[#allocation10 + $0x24c] ss:$16 sps:$4 sm:$0xff]  }
 0x1b9   :  { %2702 = vmatpush2.bf16.msra.mxu0 %v5007_v56  ;;  %2768 = vmatpush1.bf16.msra.mxu1 %v5010_v57  ;;  %v5087_v55 = vld [vmem:[#allocation10 + $0x12c] ss:$16 sps:$4 sm:$0xff]   ;;  %v5085_v57 = vld [vmem:[#allocation10 + $0x128] ss:$16 sps:$4 sm:$0xff]  }
 0x1ba   :  { %2703 = vmatprep.subr.bf16.mxu0 %v5015_v58  ;;  %2769 = vmatprep.subr.bf16.mxu1 %v5018_v59  ;;  %v5090_v56 = vld [vmem:[#allocation10 + $0x22c] ss:$16 sps:$4 sm:$0xff]   ;;  %v5088_v58 = vld [vmem:[#allocation10 + $0x228] ss:$16 sps:$4 sm:$0xff]  }
 0x1bb   :  { %v5093_v59 = vld [vmem:[#allocation10 + $0x10c] ss:$16 sps:$4 sm:$0xff]  }
 0x1bc   :  { %v5132_v28 = vld [vmem:[#allocation10 + $0x44c] ss:$16 sps:$4 sm:$0xff]  }
 0x1bd   :  { %2704 = vmatpush2.bf16.msra.mxu0 %v5013_v60  ;;  %2770 = vmatpush1.bf16.msra.mxu1 %v5016_v63  ;;  %v5096_v60 = vld [vmem:[#allocation10 + $0x20c] ss:$16 sps:$4 sm:$0xff]   ;;  %v5091_v63 = vld [vmem:[#allocation10 + $0x108] ss:$16 sps:$4 sm:$0xff]  }
 0x1be   :  { %2705 = vmatprep.subr.bf16.mxu0 %v5021_v2  ;;  %2771 = vmatprep.subr.bf16.mxu1 %v5024_v3  ;;  %v5094_v2 = vld [vmem:[#allocation10 + $0x208] ss:$16 sps:$4 sm:$0xff]   ;;  %v5099_v3 = vld [vmem:[#allocation10 + $0x3ec] ss:$16 sps:$4 sm:$0xff]  }
 0x1c1   :  { %2706 = vmatpush2.bf16.msra.mxu0 %v5019_v4  ;;  %2772 = vmatpush1.bf16.msra.mxu1 %v5022_v5  ;;  %v5102_v4 = vld [vmem:[#allocation10 + $0x4ec] ss:$16 sps:$4 sm:$0xff]   ;;  %v5097_v5 = vld [vmem:[#allocation10 + $0x3e8] ss:$16 sps:$4 sm:$0xff]  }
 0x1c2   :  { %2707 = vmatprep.subr.bf16.mxu0 %v5027_v6  ;;  %2773 = vmatprep.subr.bf16.mxu1 %v5030_v47  ;;  %v5100_v6 = vld [vmem:[#allocation10 + $0x4e8] ss:$16 sps:$4 sm:$0xff]   ;;  %v5105_v47 = vld [vmem:[#allocation10 + $0x3cc] ss:$16 sps:$4 sm:$0xff]  }
 0x1c5   :  { %2708 = vmatpush2.bf16.msra.mxu0 %v5025_v7  ;;  %2774 = vmatpush1.bf16.msra.mxu1 %v5028_v8  ;;  %v5108_v7 = vld [vmem:[#allocation10 + $0x4cc] ss:$16 sps:$4 sm:$0xff]   ;;  %v5103_v8 = vld [vmem:[#allocation10 + $0x3c8] ss:$16 sps:$4 sm:$0xff]  }
 0x1c6   :  { %2709 = vmatprep.subr.bf16.mxu0 %v5033_v9  ;;  %2775 = vmatprep.subr.bf16.mxu1 %v5036_v13  ;;  %v5106_v9 = vld [vmem:[#allocation10 + $0x4c8] ss:$16 sps:$4 sm:$0xff]   ;;  %v5111_v13 = vld [vmem:[#allocation10 + $0x3ac] ss:$16 sps:$4 sm:$0xff]  }
 0x1c9   :  { %2710 = vmatpush2.bf16.msra.mxu0 %v5031_v14  ;;  %2776 = vmatpush1.bf16.msra.mxu1 %v5034_v15  ;;  %v5114_v14 = vld [vmem:[#allocation10 + $0x4ac] ss:$16 sps:$4 sm:$0xff]   ;;  %v5109_v15 = vld [vmem:[#allocation10 + $0x3a8] ss:$16 sps:$4 sm:$0xff]  }
 0x1ca   :  { %2711 = vmatprep.subr.bf16.mxu0 %v5039_v16  ;;  %2777 = vmatprep.subr.bf16.mxu1 %v5042_v17  ;;  %v5112_v16 = vld [vmem:[#allocation10 + $0x4a8] ss:$16 sps:$4 sm:$0xff]   ;;  %v5117_v17 = vld [vmem:[#allocation10 + $0x38c] ss:$16 sps:$4 sm:$0xff]  }
 0x1cd   :  { %2712 = vmatpush2.bf16.msra.mxu0 %v5037_v22  ;;  %2778 = vmatpush1.bf16.msra.mxu1 %v5040_v23  ;;  %v5120_v22 = vld [vmem:[#allocation10 + $0x48c] ss:$16 sps:$4 sm:$0xff]   ;;  %v5118_v23 = vld [vmem:[#allocation10 + $0x488] ss:$16 sps:$4 sm:$0xff]  }
 0x1ce   :  { %2713 = vmatprep.subr.bf16.mxu0 %v5045_v24  ;;  %2779 = vmatprep.subr.bf16.mxu1 %v5048_v25  ;;  %v5123_v24 = vld [vmem:[#allocation10 + $0x36c] ss:$16 sps:$4 sm:$0xff]   ;;  %v5121_v25 = vld [vmem:[#allocation10 + $0x368] ss:$16 sps:$4 sm:$0xff]  }
 0x1d1   :  { %2714 = vmatpush2.bf16.msra.mxu0 %v5043_v26  ;;  %2780 = vmatpush1.bf16.msra.mxu1 %v5046_v27  ;;  %v5124_v26 = vld [vmem:[#allocation10 + $0x468] ss:$16 sps:$4 sm:$0xff]   ;;  %v5129_v27 = vld [vmem:[#allocation10 + $0x34c] ss:$16 sps:$4 sm:$0xff]  }
 0x1d2   :  { %2781 = vmatprep.subr.bf16.mxu1 %v5051_v29  ;;  %2806 = vmatprep.subr.bf16.mxu0 %v5054_v30  ;;  %v5127_v29 = vld [vmem:[#allocation10 + $0x348] ss:$16 sps:$4 sm:$0xff]  }
 0x1d3   :  { %v5130_v30 = vld [vmem:[#allocation10 + $0x448] ss:$16 sps:$4 sm:$0xff]  }
 0x1d4   :  { %2716 = vmatmul.mubr.bf16.vlgmr.msra.gmra.mxu0 %v5755_v33 }
 0x1d5   :  { %2782 = vmatpush2.bf16.msra.mxu1 %v5049_v31  ;;  %2807 = vmatpush1.bf16.msra.mxu0 %v5052_v32  ;;  %v5135_v31 = vld [vmem:[#allocation10 + $0x32c] ss:$16 sps:$4 sm:$0xff]  }
 0x1d6   :  { %2838 = vmatprep.mubr.bf16.mxu0 %v5726_v48  ;;  %2783 = vmatprep.subr.bf16.mxu1 %v5057_v34  ;;  %v5078_v48 = vld [vmem:[#allocation10 + $0x26c] ss:$16 sps:$4 sm:$0xff]   ;;  %v5133_v34 = vld [vmem:[#allocation10 + $0x328] ss:$16 sps:$4 sm:$0xff]  }
 0x1d7   :  { %2808 = vmatprep.subr.bf16.mxu0 %v5060_v35  ;;  %v5138_v32 = vld [vmem:[#allocation10 + $0x42c] ss:$16 sps:$4 sm:$0xff]   ;;  %v5136_v35 = vld [vmem:[#allocation10 + $0x428] ss:$16 sps:$4 sm:$0xff]  }
 0x1d9   :  { %2784 = vmatpush2.bf16.msra.mxu1 %v5055_v37  ;;  %2809 = vmatpush1.bf16.msra.mxu0 %v5058_v36  ;;  %v5141_v37 = vld [vmem:[#allocation10 + $0x30c] ss:$16 sps:$4 sm:$0xff]  }
 0x1da   :  { %2785 = vmatprep.subr.bf16.mxu1 %v5063_v10  ;;  %2810 = vmatprep.subr.bf16.mxu0 %v5066_v39  ;;  %v5144_v36 = vld [vmem:[#allocation10 + $0x40c] ss:$16 sps:$4 sm:$0xff]   ;;  %v5139_v10 = vld [vmem:[#allocation10 + $0x308] ss:$16 sps:$4 sm:$0xff]  }
 0x1db   :  { %v5142_v39 = vld [vmem:[#allocation10 + $0x408] ss:$16 sps:$4 sm:$0xff]  }
 0x1dd   :  { %2786 = vmatpush2.bf16.msra.mxu1 %v5061_v11  ;;  %2811 = vmatpush1.bf16.msra.mxu0 %v5064_v40  ;;  %v5147_v11 = vld [vmem:[#allocation10 + $0x5ec] ss:$16 sps:$4 sm:$0xff]  }
 0x1de   :  { %2787 = vmatprep.subr.bf16.mxu1 %v5069_v62  ;;  %2812 = vmatprep.subr.bf16.mxu0 %v5072_v41  ;;  %v5150_v40 = vld [vmem:[#allocation10 + $0x6ec] ss:$16 sps:$4 sm:$0xff]   ;;  %v5145_v62 = vld [vmem:[#allocation10 + $0x5e8] ss:$16 sps:$4 sm:$0xff]  }
 0x1df   :  { %v5148_v41 = vld [vmem:[#allocation10 + $0x6e8] ss:$16 sps:$4 sm:$0xff]  }
 0x1e1   :  { %2788 = vmatpush2.bf16.msra.mxu1 %v5067_v42  ;;  %2813 = vmatpush1.bf16.msra.mxu0 %v5070_v43  ;;  %v5153_v42 = vld [vmem:[#allocation10 + $0x5cc] ss:$16 sps:$4 sm:$0xff]  }
 0x1e2   :  { %2789 = vmatprep.subr.bf16.mxu1 %v5075_v44  ;;  %2814 = vmatprep.subr.bf16.mxu0 %v5078_v48  ;;  %v5156_v43 = vld [vmem:[#allocation10 + $0x6cc] ss:$16 sps:$4 sm:$0xff]   ;;  %v5151_v44 = vld [vmem:[#allocation10 + $0x5c8] ss:$16 sps:$4 sm:$0xff]  }
 0x1e3   :  { %v5154_v48 = vld [vmem:[#allocation10 + $0x6c8] ss:$16 sps:$4 sm:$0xff]  }
 0x1e5   :  { %2790 = vmatpush2.bf16.msra.mxu1 %v5073_v45  ;;  %2815 = vmatpush1.bf16.msra.mxu0 %v5076_v46  ;;  %v5159_v45 = vld [vmem:[#allocation10 + $0x5ac] ss:$16 sps:$4 sm:$0xff]  }
 0x1e6   :  { %2791 = vmatprep.subr.bf16.mxu1 %v5081_v49  ;;  %2816 = vmatprep.subr.bf16.mxu0 %v5084_v12  ;;  %v5162_v46 = vld [vmem:[#allocation10 + $0x6ac] ss:$16 sps:$4 sm:$0xff]   ;;  %v5157_v49 = vld [vmem:[#allocation10 + $0x5a8] ss:$16 sps:$4 sm:$0xff]  }
 0x1e7   :  { %v5160_v12 = vld [vmem:[#allocation10 + $0x6a8] ss:$16 sps:$4 sm:$0xff]  }
 0x1e9   :  { %2792 = vmatpush2.bf16.msra.mxu1 %v5079_v50  ;;  %2817 = vmatpush1.bf16.msra.mxu0 %v5082_v54  ;;  %v5165_v50 = vld [vmem:[#allocation10 + $0x58c] ss:$16 sps:$4 sm:$0xff]  }
 0x1ea   :  { %2793 = vmatprep.subr.bf16.mxu1 %v5087_v55  ;;  %2818 = vmatprep.subr.bf16.mxu0 %v5090_v56  ;;  %v5168_v54 = vld [vmem:[#allocation10 + $0x68c] ss:$16 sps:$4 sm:$0xff]   ;;  %v5166_v55 = vld [vmem:[#allocation10 + $0x688] ss:$16 sps:$4 sm:$0xff]  }
 0x1eb   :  { %v5171_v56 = vld [vmem:[#allocation10 + $0x56c] ss:$16 sps:$4 sm:$0xff]  }
 0x1ed   :  { %2794 = vmatpush2.bf16.msra.mxu1 %v5085_v57  ;;  %2819 = vmatpush1.bf16.msra.mxu0 %v5088_v58  ;;  %v5174_v57 = vld [vmem:[#allocation10 + $0x66c] ss:$16 sps:$4 sm:$0xff]   ;;  %v5169_v58 = vld [vmem:[#allocation10 + $0x568] ss:$16 sps:$4 sm:$0xff]  }
 0x1ee   :  { %2795 = vmatprep.subr.bf16.mxu1 %v5093_v59  ;;  %2820 = vmatprep.subr.bf16.mxu0 %v5096_v60  ;;  %v5177_v59 = vld [vmem:[#allocation10 + $0x54c] ss:$16 sps:$4 sm:$0xff]  }
 0x1ef   :  { %v5180_v60 = vld [vmem:[#allocation10 + $0x64c] ss:$16 sps:$4 sm:$0xff]  }
 0x1f1   :  { %2796 = vmatpush2.bf16.msra.mxu1 %v5091_v63  ;;  %2821 = vmatpush1.bf16.msra.mxu0 %v5094_v2  ;;  %v5175_v63 = vld [vmem:[#allocation10 + $0x548] ss:$16 sps:$4 sm:$0xff]  }
 0x1f2   :  { %2822 = vmatprep.subr.bf16.mxu0 %v5099_v3  ;;  %2847 = vmatprep.subr.bf16.mxu1 %v5102_v4  ;;  %v5178_v2 = vld [vmem:[#allocation10 + $0x648] ss:$16 sps:$4 sm:$0xff]   ;;  %v5183_v3 = vld [vmem:[#allocation10 + $0x52c] ss:$16 sps:$4 sm:$0xff]  }
 0x1f3   :  { %v5186_v4 = vld [vmem:[#allocation10 + $0x62c] ss:$16 sps:$4 sm:$0xff]  }
 0x1f4   :  { %2798 = vmatmul.mubr.bf16.vlgmr.msra.gmra.mxu1 %v5728_v51  ;;  %v5115_v51 = vld [vmem:[#allocation10 + $0x388] ss:$16 sps:$4 sm:$0xff]  }
 0x1f5   :  { %2823 = vmatpush2.bf16.msra.mxu0 %v5097_v5  ;;  %2848 = vmatpush1.bf16.msra.mxu1 %v5100_v6  ;;  %v5181_v5 = vld [vmem:[#allocation10 + $0x528] ss:$16 sps:$4 sm:$0xff]  }
 0x1f6   :  { %2879 = vmatprep.mubr.bf16.mxu1 %v5747_v1  ;;  %2824 = vmatprep.subr.bf16.mxu0 %v5105_v47  ;;  %v5126_v1 = vld [vmem:[#allocation10 + $0x46c] ss:$16 sps:$4 sm:$0xff]   ;;  %v5184_v6 = vld [vmem:[#allocation10 + $0x628] ss:$16 sps:$4 sm:$0xff]  }
 0x1f7   :  { %2849 = vmatprep.subr.bf16.mxu1 %v5108_v7  ;;  %v5189_v47 = vld [vmem:[#allocation10 + $0x50c] ss:$16 sps:$4 sm:$0xff]  }
 0x1f8   :  { %v5192_v7 = vld [vmem:[#allocation10 + $0x60c] ss:$16 sps:$4 sm:$0xff]  }
 0x1f9   :  { %2825 = vmatpush2.bf16.msra.mxu0 %v5103_v8  ;;  %2850 = vmatpush1.bf16.msra.mxu1 %v5106_v9  ;;  %v5187_v8 = vld [vmem:[#allocation10 + $0x508] ss:$16 sps:$4 sm:$0xff]  }
 0x1fa   :  { %2826 = vmatprep.subr.bf16.mxu0 %v5111_v13  ;;  %2851 = vmatprep.subr.bf16.mxu1 %v5114_v14  ;;  %v5190_v9 = vld [vmem:[#allocation10 + $0x608] ss:$16 sps:$4 sm:$0xff]   ;;  %v5195_v13 = vld [vmem:[#allocation13 + $0xac] ss:$12 sps:$4 sm:$0xff]  }
 0x1fb   :  { %v5193_v14 = vld [vmem:[#allocation13 + $0xa8] ss:$12 sps:$4 sm:$0xff]  }
 0x1fd   :  { %2827 = vmatpush2.bf16.msra.mxu0 %v5109_v15  ;;  %2852 = vmatpush1.bf16.msra.mxu1 %v5112_v16  ;;  %v5198_v15 = vld [vmem:[#allocation13 + $0x94] ss:$12 sps:$4 sm:$0xff]   ;;  %v5196_v16 = vld [vmem:[#allocation13 + $0x90] ss:$12 sps:$4 sm:$0xff]  }
 0x1fe   :  { %2828 = vmatprep.subr.bf16.mxu0 %v5117_v17  ;;  %2853 = vmatprep.subr.bf16.mxu1 %v5120_v22  ;;  %v5201_v17 = vld [vmem:[#allocation13 + $0x7c] ss:$12 sps:$4 sm:$0xff]   ;;  %v5199_v22 = vld [vmem:[#allocation13 + $0x78] ss:$12 sps:$4 sm:$0xff]  }
 0x201   :  { %2829 = vmatpush2.bf16.msra.mxu0 %v5115_v51  ;;  %2854 = vmatpush1.bf16.msra.mxu1 %v5118_v23  ;;  %v5204_v51 = vld [vmem:[#allocation13 + $0x64] ss:$12 sps:$4 sm:$0xff]   ;;  %v5202_v23 = vld [vmem:[#allocation13 + $0x60] ss:$12 sps:$4 sm:$0xff]  }
 0x202   :  { %2830 = vmatprep.subr.bf16.mxu0 %v5123_v24  ;;  %2855 = vmatprep.subr.bf16.mxu1 %v5126_v1  ;;  %v5257_v24 = vld [vmem:[#allocation13 + $0x228] ss:$12 sps:$4 sm:$0xff]   ;;  %v5259_v1 = vld [vmem:[#allocation13 + $0x22c] ss:$12 sps:$4 sm:$0xff]  }
 0x205   :  { %2831 = vmatpush2.bf16.msra.mxu0 %v5121_v25  ;;  %2856 = vmatpush1.bf16.msra.mxu1 %v5124_v26  ;;  %v5207_v25 = vld [vmem:[#allocation13 + $0x4c] ss:$12 sps:$4 sm:$0xff]   ;;  %v5260_v26 = vld [vmem:[#allocation13 + $0x210] ss:$12 sps:$4 sm:$0xff]  }
 0x206   :  { %2832 = vmatprep.subr.bf16.mxu0 %v5129_v27  ;;  %2857 = vmatprep.subr.bf16.mxu1 %v5132_v28  ;;  %v5265_v27 = vld [vmem:[#allocation13 + $0x1fc] ss:$12 sps:$4 sm:$0xff]   ;;  %v5210_v28 = vld [vmem:[#allocation13 + $0x34] ss:$12 sps:$4 sm:$0xff]  }
 0x209   :  { %2833 = vmatpush2.bf16.msra.mxu0 %v5127_v29  ;;  %2858 = vmatpush1.bf16.msra.mxu1 %v5130_v30  ;;  %v5263_v29 = vld [vmem:[#allocation13 + $0x1f8] ss:$12 sps:$4 sm:$0xff]   ;;  %v5208_v30 = vld [vmem:[#allocation13 + $0x30] ss:$12 sps:$4 sm:$0xff]  }
 0x20a   :  { %2834 = vmatprep.subr.bf16.mxu0 %v5135_v31  ;;  %2859 = vmatprep.subr.bf16.mxu1 %v5138_v32  ;;  %v5268_v31 = vld [vmem:[#allocation13 + $0x1e4] ss:$12 sps:$4 sm:$0xff]   ;;  %v5213_v32 = vld [vmem:[#allocation13 + $0x1c] ss:$12 sps:$4 sm:$0xff]  }
 0x20d   :  { %2835 = vmatpush2.bf16.msra.mxu0 %v5133_v34  ;;  %2860 = vmatpush1.bf16.msra.mxu1 %v5136_v35  ;;  %v5266_v34 = vld [vmem:[#allocation13 + $0x1e0] ss:$12 sps:$4 sm:$0xff]   ;;  %v5211_v35 = vld [vmem:[#allocation13 + $0x18] ss:$12 sps:$4 sm:$0xff]  }
 0x20e   :  { %2836 = vmatprep.subr.bf16.mxu0 %v5141_v37  ;;  %2861 = vmatprep.subr.bf16.mxu1 %v5144_v36  ;;  %v5271_v37 = vld [vmem:[#allocation13 + $0x1cc] ss:$12 sps:$4 sm:$0xff]   ;;  %v5216_v36 = vld [vmem:[#allocation13 + $0x4] ss:$12 sps:$4 sm:$0xff]  }
 0x211   :  { %2837 = vmatpush2.bf16.msra.mxu0 %v5139_v10  ;;  %2862 = vmatpush1.bf16.msra.mxu1 %v5142_v39  ;;  %v5269_v10 = vld [vmem:[#allocation13 + $0x1c8] ss:$12 sps:$4 sm:$0xff]   ;;  %v5214_v39 = vld [vmem:[#allocation13] ss:$12 sps:$4 sm:$0xff]  }
 0x212   :  { %2863 = vmatprep.subr.bf16.mxu1 %v5147_v11  ;;  %2888 = vmatprep.subr.bf16.mxu0 %v5150_v40  ;;  %v5274_v11 = vld [vmem:[#allocation13 + $0x1b4] ss:$12 sps:$4 sm:$0xff]   ;;  %v5219_v40 = vld [vmem:[#allocation13 + $0x16c] ss:$12 sps:$4 sm:$0xff]  }
 0x214   :  { %2839 = vmatmul.mubr.bf16.vlgmr.msra.gmra.mxu0 %v5730_v52  ;;  %v5163_v52 = vld [vmem:[#allocation10 + $0x588] ss:$16 sps:$4 sm:$0xff]  }
 0x215   :  { %2864 = vmatpush2.bf16.msra.mxu1 %v5145_v62  ;;  %2889 = vmatpush1.bf16.msra.mxu0 %v5148_v41  ;;  %v5272_v62 = vld [vmem:[#allocation13 + $0x1b0] ss:$12 sps:$4 sm:$0xff]   ;;  %v5217_v41 = vld [vmem:[#allocation13 + $0x168] ss:$12 sps:$4 sm:$0xff]  }
 0x216   :  { %2865 = vmatprep.subr.bf16.mxu1 %v5153_v42  ;;  %2890 = vmatprep.subr.bf16.mxu0 %v5156_v43  ;;  %v5222_v42 = vld [vmem:[#allocation13 + $0x154] ss:$12 sps:$4 sm:$0xff]  }
 0x217   :  { %2920 = vmatprep.mubr.bf16.mxu0 %v5556_v0  ;;  %v5172_v0 = vld [vmem:[#allocation10 + $0x668] ss:$16 sps:$4 sm:$0xff]  }
 0x219   :  { %2866 = vmatpush2.bf16.msra.mxu1 %v5151_v44  ;;  %2891 = vmatpush1.bf16.msra.mxu0 %v5154_v48  ;;  %v5220_v48 = vld [vmem:[#allocation13 + $0x150] ss:$12 sps:$4 sm:$0xff]  }
 0x21a   :  { %2867 = vmatprep.subr.bf16.mxu1 %v5159_v45  ;;  %2892 = vmatprep.subr.bf16.mxu0 %v5162_v46 }
 0x21d   :  { %2868 = vmatpush2.bf16.msra.mxu1 %v5157_v49  ;;  %2893 = vmatpush1.bf16.msra.mxu0 %v5160_v12  ;;  %v5225_v49 = vld [vmem:[#allocation13 + $0x13c] ss:$12 sps:$4 sm:$0xff]  }
 0x21e   :  { %2869 = vmatprep.subr.bf16.mxu1 %v5165_v50  ;;  %2894 = vmatprep.subr.bf16.mxu0 %v5168_v54  ;;  %v5277_v12 = vld [vmem:[#allocation13 + $0x19c] ss:$12 sps:$4 sm:$0xff]   ;;  %v5275_v50 = vld [vmem:[#allocation13 + $0x198] ss:$12 sps:$4 sm:$0xff]  }
 0x221   :  { %2870 = vmatpush2.bf16.msra.mxu1 %v5163_v52  ;;  %2895 = vmatpush1.bf16.msra.mxu0 %v5166_v55  ;;  %v5223_v55 = vld [vmem:[#allocation13 + $0x138] ss:$12 sps:$4 sm:$0xff]  }
 0x222   :  { %2871 = vmatprep.subr.bf16.mxu1 %v5171_v56  ;;  %2896 = vmatprep.subr.bf16.mxu0 %v5174_v57 }
 0x225   :  { %2872 = vmatpush2.bf16.msra.mxu1 %v5169_v58  ;;  %2897 = vmatpush1.bf16.msra.mxu0 %v5172_v0  ;;  %v5228_v58 = vld [vmem:[#allocation13 + $0x124] ss:$12 sps:$4 sm:$0xff]   ;;  %v5278_v0 = vld [vmem:[#allocation13 + $0x180] ss:$12 sps:$4 sm:$0xff]  }
 0x226   :  { %2873 = vmatprep.subr.bf16.mxu1 %v5177_v59  ;;  %2898 = vmatprep.subr.bf16.mxu0 %v5180_v60  ;;  %v5280_v59 = vld [vmem:[#allocation13 + $0x184] ss:$12 sps:$4 sm:$0xff]   ;;  %v5283_v60 = vld [vmem:[#allocation13 + $0x2ec] ss:$12 sps:$4 sm:$0xff]  }
 0x229   :  { %2874 = vmatpush2.bf16.msra.mxu1 %v5175_v63  ;;  %2899 = vmatpush1.bf16.msra.mxu0 %v5178_v2  ;;  %v5226_v63 = vld [vmem:[#allocation13 + $0x120] ss:$12 sps:$4 sm:$0xff]   ;;  %v5281_v2 = vld [vmem:[#allocation13 + $0x2e8] ss:$12 sps:$4 sm:$0xff]  }
 0x22a   :  { %2875 = vmatprep.subr.bf16.mxu1 %v5183_v3  ;;  %2900 = vmatprep.subr.bf16.mxu0 %v5186_v4  ;;  %v5231_v3 = vld [vmem:[#allocation13 + $0x10c] ss:$12 sps:$4 sm:$0xff]   ;;  %v5286_v4 = vld [vmem:[#allocation13 + $0x2d4] ss:$12 sps:$4 sm:$0xff]  }
 0x22d   :  { %2876 = vmatpush2.bf16.msra.mxu1 %v5181_v5  ;;  %2901 = vmatpush1.bf16.msra.mxu0 %v5184_v6  ;;  %v5229_v5 = vld [vmem:[#allocation13 + $0x108] ss:$12 sps:$4 sm:$0xff]   ;;  %v5284_v6 = vld [vmem:[#allocation13 + $0x2d0] ss:$12 sps:$4 sm:$0xff]  }
 0x22e   :  { %2877 = vmatprep.subr.bf16.mxu1 %v5189_v47  ;;  %2902 = vmatprep.subr.bf16.mxu0 %v5192_v7  ;;  %v5234_v47 = vld [vmem:[#allocation13 + $0xf4] ss:$12 sps:$4 sm:$0xff]   ;;  %v5289_v7 = vld [vmem:[#allocation13 + $0x2bc] ss:$12 sps:$4 sm:$0xff]  }
 0x231   :  { %2878 = vmatpush2.bf16.msra.mxu1 %v5187_v8  ;;  %2903 = vmatpush1.bf16.msra.mxu0 %v5190_v9  ;;  %v5232_v8 = vld [vmem:[#allocation13 + $0xf0] ss:$12 sps:$4 sm:$0xff]   ;;  %v5287_v9 = vld [vmem:[#allocation13 + $0x2b8] ss:$12 sps:$4 sm:$0xff]  }
 0x232   :  { %3594 = vmatprep.subr.bf16.mxu0 %v5195_v13  ;;  %3635 = vmatprep.subr.bf16.mxu1 %v5259_v1  ;;  %v5237_v13 = vld [vmem:[#allocation13 + $0xdc] ss:$12 sps:$4 sm:$0xff]   ;;  %v5298_v1 = vld [vmem:[#allocation13 + $0x274] ss:$12 sps:$4 sm:$0xff]  }
 0x234   :  { %2880 = vmatmul.mubr.bf16.vlgmr.msra.gmra.mxu1 %v5755_v33  ;;  %2921 = vmatmul.mubr.bf16.vlgmr.msra.gmra.mxu0 %v5749_v53  ;;  %v5262_v33 = vld [vmem:[#allocation13 + $0x214] ss:$12 sps:$4 sm:$0xff]  }
 0x235   :  { %3595 = vmatpush1.bf16.msra.mxu0 %v5193_v14  ;;  %3636 = vmatpush1.bf16.msra.mxu1 %v5257_v24  ;;  %v5205_v53 = vld [vmem:[#allocation13 + $0x48] ss:$12 sps:$4 sm:$0xff]   ;;  %v5292_v14 = vld [vmem:[#allocation13 + $0x2a4] ss:$12 sps:$4 sm:$0xff]  }
 0x236   :  { %3596 = vmatprep.subr.bf16.mxu0 %v5198_v15  ;;  %3637 = vmatprep.subr.bf16.mxu1 %v5262_v33  ;;  %v5235_v15 = vld [vmem:[#allocation13 + $0xd8] ss:$12 sps:$4 sm:$0xff]   ;;  %v5241_v24 = vld [vmem:[#allocation13 + $0x170] ss:$12 sps:$4 sm:$0xff]  }
 0x239   :  { %3597 = vmatpush1.bf16.msra.mxu0 %v5196_v16  ;;  %3638 = vmatpush1.bf16.msra.mxu1 %v5260_v26  ;;  %v5290_v16 = vld [vmem:[#allocation13 + $0x2a0] ss:$12 sps:$4 sm:$0xff]  }
 0x23a   :  { %3598 = vmatprep.subr.bf16.mxu0 %v5201_v17  ;;  %3639 = vmatprep.subr.bf16.mxu1 %v5265_v27  ;;  %v5240_v17 = vld [vmem:[#allocation13 + $0xc4] ss:$12 sps:$4 sm:$0xff]  }
 0x23b   :  { %v5299_v27 = vld [vmem:[#allocation13 + $0x258] ss:$12 sps:$4 sm:$0xff]  }
 0x23d   :  { %3599 = vmatpush1.bf16.msra.mxu0 %v5199_v22  ;;  %3640 = vmatpush1.bf16.msra.mxu1 %v5263_v29  ;;  %v5295_v22 = vld [vmem:[#allocation13 + $0x28c] ss:$12 sps:$4 sm:$0xff]  }
 0x23e   :  { %3600 = vmatprep.subr.bf16.mxu0 %v5204_v51  ;;  %3641 = vmatprep.subr.bf16.mxu1 %v5268_v31  ;;  %v5238_v51 = vld [vmem:[#allocation13 + $0xc0] ss:$12 sps:$4 sm:$0xff]  }
 0x23f   :  { %v5302_v31 = vld [vmem:[#allocation13 + $0x240] ss:$12 sps:$4 sm:$0xff]  }
 0x241   :  { %3601 = vmatpush1.bf16.msra.mxu0 %v5202_v23  ;;  %3642 = vmatpush1.bf16.msra.mxu1 %v5266_v34  ;;  %v5293_v23 = vld [vmem:[#allocation13 + $0x288] ss:$12 sps:$4 sm:$0xff]   ;;  %v5773_v34 = vld [vmem:[#allocation11] sm:$0xf] }
 0x242   :  { %3602 = vmatprep.subr.bf16.mxu0 %v5207_v25  ;;  %3643 = vmatprep.subr.bf16.mxu1 %v5271_v37  ;;  %v5296_v25 = vld [vmem:[#allocation13 + $0x270] ss:$12 sps:$4 sm:$0xff]   ;;  %v1468_v37 = vrot.slane %v5773_v34, %v5712_v20 }
 0x245   :  { %3603 = vmatpush1.bf16.msra.mxu0 %v5205_v53  ;;  %3644 = vmatpush1.bf16.msra.mxu1 %v5269_v10  ;;  %v5301_v53 = vld [vmem:[#allocation13 + $0x25c] ss:$12 sps:$4 sm:$0xff]  }
 0x246   :  { %3604 = vmatprep.subr.bf16.mxu0 %v5210_v28  ;;  %3645 = vmatprep.subr.bf16.mxu1 %v5274_v11 }
 0x249   :  { %3605 = vmatpush1.bf16.msra.mxu0 %v5208_v30  ;;  %3646 = vmatpush1.bf16.msra.mxu1 %v5272_v62  ;;  %v5304_v30 = vld [vmem:[#allocation13 + $0x244] ss:$12 sps:$4 sm:$0xff]  }
 0x24a   :  { %3606 = vmatprep.subr.bf16.mxu0 %v5213_v32  ;;  %3647 = vmatprep.subr.bf16.mxu1 %v5277_v12  ;;  %v5305_v32 = vld [vmem:[#allocation13 + $0x2f0] ss:$12 sps:$4 sm:$0xff]  }
 0x24d   :  { %3607 = vmatpush1.bf16.msra.mxu0 %v5211_v35  ;;  %3648 = vmatpush1.bf16.msra.mxu1 %v5275_v50  ;;  %v1464_v35 = vrot.slane %v5773_v34, %v5706_v18 }
 0x24e   :  { %3608 = vmatprep.subr.bf16.mxu0 %v5216_v36  ;;  %3649 = vmatprep.subr.bf16.mxu1 %v5280_v59  ;;  %v5249_v59 = vld [vmem:[#allocation13 + $0x110] ss:$12 sps:$4 sm:$0xff]  }
 0x251   :  { %3609 = vmatpush1.bf16.msra.mxu0 %v5214_v39  ;;  %3650 = vmatpush1.bf16.msra.mxu1 %v5278_v0  ;;  %v5248_v0 = vld [vmem:[#allocation13 + $0x68] ss:$12 sps:$4 sm:$0xff]  }
 0x252   :  { %3610 = vmatprep.subr.bf16.mxu0 %v5219_v40  ;;  %3651 = vmatprep.subr.bf16.mxu1 %v5283_v60  ;;  %v5250_v60 = vld [vmem:[#allocation13 + $0x50] ss:$12 sps:$4 sm:$0xff]  }
 0x254   :  { %v5765_v43 = vpop.f32.mrf.mxu0  ;;  %v5767_v44 = vpop.f32.mrf.mxu1 }
 0x255   :  { %3611 = vmatpush2.bf16.msra.mxu0 %v5217_v41  ;;  %3652 = vmatpush2.bf16.msra.mxu1 %v5281_v2  ;;  %v2636_v36 = vadd.f32 %v5765_v43, %v1464_v35  ;;  %v5243_v43 = vld [vmem:[#allocation13 + $0x158] ss:$12 sps:$4 sm:$0xff]  }
 0x256   :  { %v5769_v45 = vpop.f32.mrf.mxu0  ;;  %v5771_v46 = vpop.f32.mrf.mxu1  ;;  %3612 = vmatprep.subr.bf16.mxu0 %v5222_v42  ;;  %3653 = vmatprep.subr.bf16.mxu1 %v5286_v4  ;;  %v5252_v2 = vld [vmem:[#allocation13 + $0x38] ss:$12 sps:$4 sm:$0xff]  }
 0x257   :  { %v2638_v10 = vadd.f32 %v5769_v45, %v1468_v37  ;;  %v2677_v39 = vadd.f32 %v5767_v44, %v2636_v36  ;;  %v5244_v44 = vld [vmem:[#allocation13 + $0x98] ss:$12 sps:$4 sm:$0xff]   ;;  %v5245_v45 = vld [vmem:[#allocation13 + $0x140] ss:$12 sps:$4 sm:$0xff]  }
 0x258   :  { %v2639_v54 = vpop.f32.mrf.mxu0  ;;  %v2680_v52 = vpop.f32.mrf.mxu1 }
 0x259   :  { %3613 = vmatpush2.bf16.msra.mxu0 %v5220_v48  ;;  %3654 = vmatpush2.bf16.msra.mxu1 %v5284_v6  ;;  %v2679_v40 = vadd.f32 %v5771_v46, %v2638_v10  ;;  %v5246_v46 = vld [vmem:[#allocation13 + $0x80] ss:$12 sps:$4 sm:$0xff]  }
 0x25a   :  { %v2640_v56 = vpop.f32.mrf.mxu0  ;;  %v2681_v57 = vpop.f32.mrf.mxu1  ;;  %3614 = vmatprep.subr.bf16.mxu0 %v5225_v49  ;;  %3655 = vmatprep.subr.bf16.mxu1 %v5289_v7 }
 0x25b   :  { %v5242_v56 = vld [vmem:[#allocation13 + $0xb0] ss:$12 sps:$4 sm:$0xff]  }
 0x25d   :  { %3615 = vmatpush2.bf16.msra.mxu0 %v5223_v55  ;;  %3656 = vmatpush2.bf16.msra.mxu1 %v5287_v9 }
 0x25e   :  { %3616 = vmatprep.subr.bf16.mxu0 %v5228_v58  ;;  %3657 = vmatprep.subr.bf16.mxu1 %v5292_v14  ;;  %v5247_v58 = vld [vmem:[#allocation13 + $0x128] ss:$12 sps:$4 sm:$0xff]  }
 0x261   :  { %3617 = vmatpush2.bf16.msra.mxu0 %v5226_v63  ;;  %3658 = vmatpush2.bf16.msra.mxu1 %v5290_v16  ;;  %v5251_v63 = vld [vmem:[#allocation13 + $0xf8] ss:$12 sps:$4 sm:$0xff]  }
 0x262   :  { %3618 = vmatprep.subr.bf16.mxu0 %v5231_v3  ;;  %3659 = vmatprep.subr.bf16.mxu1 %v5295_v22  ;;  %v5253_v3 = vld [vmem:[#allocation13 + $0xe0] ss:$12 sps:$4 sm:$0xff]   ;;  %v1476_v22 = vrot.slane %v5773_v34, %v1193_v21  ;;  %v5306_v21 = vld [vmem:[#allocation13 + $0x230] ss:$12 sps:$4 sm:$0xff]  }
 0x265   :  { %3619 = vmatpush2.bf16.msra.mxu0 %v5229_v5  ;;  %3660 = vmatpush2.bf16.msra.mxu1 %v5293_v23  ;;  %v5254_v5 = vld [vmem:[#allocation13 + $0x20] ss:$12 sps:$4 sm:$0xff]  }
 0x266   :  { %3620 = vmatprep.subr.bf16.mxu0 %v5234_v47  ;;  %3661 = vmatprep.subr.bf16.mxu1 %v5298_v1  ;;  %v5255_v47 = vld [vmem:[#allocation13 + $0xc8] ss:$12 sps:$4 sm:$0xff]  }
 0x269   :  { %3621 = vmatpush2.bf16.msra.mxu0 %v5232_v8  ;;  %3662 = vmatpush2.bf16.msra.mxu1 %v5296_v25  ;;  %v5256_v8 = vld [vmem:[#allocation13 + $0x8] ss:$12 sps:$4 sm:$0xff]  }
 0x26a   :  { %3622 = vmatprep.subr.bf16.mxu0 %v5237_v13  ;;  %3663 = vmatprep.subr.bf16.mxu1 %v5301_v53 }
 0x26d   :  { %3623 = vmatpush2.bf16.msra.mxu0 %v5235_v15  ;;  %3664 = vmatpush2.bf16.msra.mxu1 %v5299_v27 }
 0x26e   :  { %3624 = vmatprep.subr.bf16.mxu0 %v5240_v17  ;;  %3665 = vmatprep.subr.bf16.mxu1 %v5304_v30  ;;  %v1472_v17 = vrot.slane %v5773_v34, %v5709_v19 }
 0x271   :  { %3625 = vmatpush2.bf16.msra.mxu0 %v5238_v51  ;;  %3666 = vmatpush2.bf16.msra.mxu1 %v5302_v31 }
 0x272   :  { %4542 = vmatprep.subr.bf16.mxu0 %v5241_v24  ;;  %4564 = vmatprep.subr.bf16.mxu1 %v5305_v32 }
 0x274   :  { %v2758_v26 = vpop.f32.mrf.mxu1 }
 0x276   :  { %v2760_v33 = vpop.f32.mrf.mxu1 }
 0x278   :  { %v2762_v28 = vpop.f32.mrf.mxu1 }
 0x27a   :  { %v2763_v29 = vpop.f32.mrf.mxu1 }
 0x294   :  { %v2717_v11 = vpop.f32.mrf.mxu0 }
 0x295   :  { %v2718_v62 = vadd.f32 %v2717_v11, %v2677_v39  ;;  %v5307_v39 = vld [vmem:[#allocation13 + $0x2d8] ss:$12 sps:$4 sm:$0xff]  }
 0x296   :  { %v2719_v41 = vpop.f32.mrf.mxu0  ;;  %v5308_v11 = vld [vmem:[#allocation13 + $0x218] ss:$12 sps:$4 sm:$0xff]  }
 0x297   :  { %v2759_v42 = vadd.f32 %v2758_v26, %v2718_v62  ;;  %v2720_v48 = vadd.f32 %v2719_v41, %v2679_v40  ;;  %v5309_v40 = vld [vmem:[#allocation13 + $0x2c0] ss:$12 sps:$4 sm:$0xff]   ;;  %v5311_v41 = vld [vmem:[#allocation13 + $0x2a8] ss:$12 sps:$4 sm:$0xff]  }
 0x298   :  { %v2721_v49 = vpop.f32.mrf.mxu0  ;;  %v5310_v62 = vld [vmem:[#allocation13 + $0x200] ss:$12 sps:$4 sm:$0xff]  }
 0x299   :  { %v2761_v12 = vadd.f32 %v2760_v33, %v2720_v48  ;;  %v2929_v50 = vmax.f32 %v2759_v42, 0.0  ;;  %v5321_v42 = vld [vmem:[#allocation14 + $0x78] sm:$0xff]   ;;  %v5323_v49 = vld [vmem:[#allocation14 + $0x70] sm:$0xff]  }
 0x29a   :  { %v2722_v54 = vpop.f32.mrf.mxu0  ;;  %v5322_v48 = vld [vmem:[#allocation14 + $0x38] sm:$0xff]  }
 0x29b   :  { %v2930_v52 = vmax.f32 %v2761_v12, 0.0  ;;  %v2933_v57 = vpack.c.bf16 %v2929_v50, %v2929_v50  ;;  %v5312_v12 = vld [vmem:[#allocation13 + $0x1e8] ss:$12 sps:$4 sm:$0xff]   ;;  %v5313_v54 = vld [vmem:[#allocation13 + $0x290] ss:$12 sps:$4 sm:$0xff]  }
 0x29c   :  { %v5324_v50 = vld [vmem:[#allocation14 + $0x30] sm:$0xff]  }
 0x29d   :  { %v2934_v55 = vpack.c.bf16 %v2930_v52, %v2930_v52  ;;  %v5325_v52 = vld [vmem:[#allocation14 + $0x68] sm:$0xff]  }
 0x29f   :  { %3626 = vmatprep.mubr.bf16.mxu0 %v2934_v55 }
 0x2a0   :  { %3627 = vmatmul.mubr.bf16.vlgmr.msra.gmra.mxu0 %v2933_v57 }
 0x2a1   :  { %4543 = vmatpush3.bf16.msra.mxu0 %v5242_v56  ;;  %3708 = vmatprep.mubr.bf16.mxu0 %v2934_v55  ;;  %v5314_v55 = vld [vmem:[#allocation13 + $0x1d0] ss:$12 sps:$4 sm:$0xff]   ;;  %v5326_v56 = vld [vmem:[#allocation14 + $0x28] sm:$0xff]  }
 0x2a2   :  { %4544 = vmatprep.subr.bf16.mxu0 %v5243_v43  ;;  %v5327_v43 = vld [vmem:[#allocation14 + $0x60] sm:$0xff]  }
 0x2a5   :  { %4545 = vmatpush3.bf16.msra.mxu0 %v5244_v44  ;;  %v5316_v44 = vld [vmem:[#allocation13 + $0x1b8] ss:$12 sps:$4 sm:$0xff]  }
 0x2a6   :  { %4546 = vmatprep.subr.bf16.mxu0 %v5245_v45  ;;  %v5328_v45 = vld [vmem:[#allocation14 + $0x20] sm:$0xff]  }
 0x2a9   :  { %4547 = vmatpush3.bf16.msra.mxu0 %v5246_v46  ;;  %v5317_v46 = vld [vmem:[#allocation13 + $0x260] ss:$12 sps:$4 sm:$0xff]  }
 0x2aa   :  { %4548 = vmatprep.subr.bf16.mxu0 %v5247_v58  ;;  %v5329_v58 = vld [vmem:[#allocation14 + $0x58] sm:$0xff]  }
 0x2ad   :  { %4549 = vmatpush3.bf16.msra.mxu0 %v5248_v0  ;;  %v5318_v0 = vld [vmem:[#allocation13 + $0x1a0] ss:$12 sps:$4 sm:$0xff]  }
 0x2ae   :  { %4550 = vmatprep.subr.bf16.mxu0 %v5249_v59  ;;  %v5330_v59 = vld [vmem:[#allocation14 + $0x18] sm:$0xff]  }
 0x2b1   :  { %4551 = vmatpush3.bf16.msra.mxu0 %v5250_v60  ;;  %v5319_v60 = vld [vmem:[#allocation13 + $0x248] ss:$12 sps:$4 sm:$0xff]  }
 0x2b2   :  { %4552 = vmatprep.subr.bf16.mxu0 %v5251_v63  ;;  %v5331_v63 = vld [vmem:[#allocation14 + $0x50] sm:$0xff]  }
 0x2b4   :  { %v2799_v4 = vpop.f32.mrf.mxu1 }
 0x2b5   :  { %4553 = vmatpush3.bf16.msra.mxu0 %v5252_v2  ;;  %v2800_v51 = vadd.f32 %v2799_v4, %v1472_v17  ;;  %v5320_v2 = vld [vmem:[#allocation13 + $0x188] ss:$12 sps:$4 sm:$0xff]  }
 0x2b6   :  { %v2801_v6 = vpop.f32.mrf.mxu1  ;;  %4554 = vmatprep.subr.bf16.mxu0 %v5253_v3  ;;  %v5332_v3 = vld [vmem:[#allocation14 + $0x10] sm:$0xff]   ;;  %v5333_v4 = vld [vmem:[#allocation14 + $0x48] sm:$0xff]  }
 0x2b7   :  { %v2802_v23 = vadd.f32 %v2801_v6, %v1476_v22  ;;  %v5335_v6 = vld [vmem:[#allocation14 + $0x40] sm:$0xff]   ;;  %v5343_v22 = vld [vmem:[#allocation14 + $0x88] sm:$0xff]  }
 0x2b8   :  { %v2803_v7 = vpop.f32.mrf.mxu1 }
 0x2b9   :  { %4555 = vmatpush3.bf16.msra.mxu0 %v5254_v5  ;;  %v5334_v5 = vld [vmem:[#allocation14 + $0x8] sm:$0xff]   ;;  %v5337_v7 = vld [vmem:[#allocation14 + $0xb8] sm:$0xff]  }
 0x2ba   :  { %v2804_v9 = vpop.f32.mrf.mxu1  ;;  %4556 = vmatprep.subr.bf16.mxu0 %v5255_v47  ;;  %v5336_v47 = vld [vmem:[#allocation14] sm:$0xff]  }
 0x2bb   :  { %v5339_v9 = vld [vmem:[#allocation14 + $0xa8] sm:$0xff]  }
 0x2bd   :  { %4557 = vmatpush3.bf16.msra.mxu0 %v5256_v8  ;;  %v5338_v8 = vld [vmem:[#allocation14 + $0xb0] sm:$0xff]  }
 0x2be   :  { %4586 = vmatprep.subr.bf16.mxu0 %v5321_v42 }
 0x2c0   :  { %3709 = vmatmul.mubr.bf16.vlgmr.msra.gmra.mxu0 %v2933_v57  ;;  %v5315_v57 = vld [vmem:[#allocation13 + $0x278] ss:$12 sps:$4 sm:$0xff]  }
 0x2c1   :  { %4587 = vmatpush3.bf16.msra.mxu0 %v5322_v48 }
 0x2c2   :  { %4588 = vmatprep.subr.bf16.mxu0 %v5323_v49 }
 0x2c5   :  { %4589 = vmatpush3.bf16.msra.mxu0 %v5324_v50 }
 0x2c6   :  { %4590 = vmatprep.subr.bf16.mxu0 %v5325_v52 }
 0x2c9   :  { %4591 = vmatpush3.bf16.msra.mxu0 %v5326_v56 }
 0x2ca   :  { %4592 = vmatprep.subr.bf16.mxu0 %v5327_v43 }
 0x2cd   :  { %4593 = vmatpush3.bf16.msra.mxu0 %v5328_v45 }
 0x2ce   :  { %4594 = vmatprep.subr.bf16.mxu0 %v5329_v58 }
 0x2d1   :  { %4595 = vmatpush3.bf16.msra.mxu0 %v5330_v59 }
 0x2d2   :  { %4596 = vmatprep.subr.bf16.mxu0 %v5331_v63 }
 0x2d4   :  { %v2840_v13 = vpop.f32.mrf.mxu0 }
 0x2d5   :  { %v2841_v24 = vadd.f32 %v2840_v13, %v2800_v51  ;;  %4597 = vmatpush3.bf16.msra.mxu0 %v5332_v3  ;;  %v5340_v13 = vld [vmem:[#allocation14 + $0xa0] sm:$0xff]  }
 0x2d6   :  { %v2842_v14 = vpop.f32.mrf.mxu0  ;;  %4598 = vmatprep.subr.bf16.mxu0 %v5333_v4 }
 0x2d7   :  { %v2843_v26 = vadd.f32 %v2842_v14, %v2802_v23  ;;  %v5341_v14 = vld [vmem:[#allocation14 + $0x98] sm:$0xff]  }
 0x2d8   :  { %v2844_v15 = vpop.f32.mrf.mxu0 }
 0x2d9   :  { %4599 = vmatpush3.bf16.msra.mxu0 %v5334_v5  ;;  %v5342_v15 = vld [vmem:[#allocation14 + $0x90] sm:$0xff]  }
 0x2da   :  { %v2845_v16 = vpop.f32.mrf.mxu0  ;;  %4600 = vmatprep.subr.bf16.mxu0 %v5335_v6 }
 0x2dd   :  { %4601 = vmatpush3.bf16.msra.mxu0 %v5336_v47 }
 0x2f4   :  { %v2881_v1 = vpop.f32.mrf.mxu1  ;;  %v2922_v25 = vpop.f32.mrf.mxu0 }
 0x2f5   :  { %v2882_v33 = vadd.f32 %v2881_v1, %v2841_v24  ;;  %v5344_v24 = vld [vmem:[#allocation14 + $0x80] sm:$0xff]  }
 0x2f6   :  { %v2883_v53 = vpop.f32.mrf.mxu1  ;;  %v2924_v27 = vpop.f32.mrf.mxu0 }
 0x2f7   :  { %v2923_v28 = vadd.f32 %v2922_v25, %v2882_v33  ;;  %v2884_v29 = vadd.f32 %v2883_v53, %v2843_v26 }
 0x2f8   :  { %v2885_v30 = vpop.f32.mrf.mxu1  ;;  %v2926_v31 = vpop.f32.mrf.mxu0 }
 0x2f9   :  { %v2925_v32 = vadd.f32 %v2924_v27, %v2884_v29  ;;  %v2931_v35 = vmax.f32 %v2923_v28, 0.0  ;;  %v3065_v27 = vld [vmem:[%s5818_s8] sm:$0x7] }
 0x2fa   :  { %v2886_v37 = vpop.f32.mrf.mxu1  ;;  %v2927_v36 = vpop.f32.mrf.mxu0  ;;  %v3070_v28 = vrot.slane %v3065_v27, %v5706_v18  ;;  %v3074_v29 = vrot.slane %v3065_v27, %v5712_v20 }
 0x2fb   :  { %v2932_v61 = vmax.f32 %v2925_v32, 0.0  ;;  %v2935_v34 = vpack.c.bf16 %v2931_v35, %v2931_v35 }
 0x2fd   :  { %v2936_v10 = vpack.c.bf16 %v2932_v61, %v2932_v61 }
 0x2ff   :  { %3667 = vmatprep.mubr.bf16.mxu1 %v2936_v10 }
 0x300   :  { %3668 = vmatmul.mubr.bf16.vlgmr.msra.gmra.mxu1 %v2935_v34 }
 0x301   :  { %4565 = vmatpush3.bf16.msra.mxu1 %v5306_v21  ;;  %3748 = vmatprep.mubr.bf16.mxu1 %v2936_v10 }
 0x302   :  { %4566 = vmatprep.subr.bf16.mxu1 %v5307_v39 }
 0x305   :  { %4567 = vmatpush3.bf16.msra.mxu1 %v5308_v11  ;;  %v3078_v11 = vrot.slane %v3065_v27, %v5709_v19 }
 0x306   :  { %4568 = vmatprep.subr.bf16.mxu1 %v5309_v40 }
 0x309   :  { %4569 = vmatpush3.bf16.msra.mxu1 %v5310_v62 }
 0x30a   :  { %4570 = vmatprep.subr.bf16.mxu1 %v5311_v41 }
 0x30d   :  { %4571 = vmatpush3.bf16.msra.mxu1 %v5312_v12 }
 0x30e   :  { %4572 = vmatprep.subr.bf16.mxu1 %v5313_v54 }
 0x311   :  { %4573 = vmatpush3.bf16.msra.mxu1 %v5314_v55 }
 0x312   :  { %4574 = vmatprep.subr.bf16.mxu1 %v5315_v57  ;;  %v4498_v57 = vld [vmem:[%s5820_s10] ss:$0 sm:$0xff] }
 0x315   :  { %4575 = vmatpush3.bf16.msra.mxu1 %v5316_v44 }
 0x316   :  { %4576 = vmatprep.subr.bf16.mxu1 %v5317_v46 }
 0x319   :  { %4577 = vmatpush3.bf16.msra.mxu1 %v5318_v0 }
 0x31a   :  { %4578 = vmatprep.subr.bf16.mxu1 %v5319_v60  ;;  %v5347_v60 = vld [vmem:[#allocation5] sm:$0xff] }
 0x31d   :  { %4579 = vmatpush3.bf16.msra.mxu1 %v5320_v2 }
 0x31e   :  { %4657 = vmatprep.subr.bf16.mxu1 %v5557_v38 }
 0x320   :  { %3749 = vmatmul.mubr.bf16.vlgmr.msra.gmra.mxu1 %v2935_v34 }
 0x321   :  { %4673 = vmatprep.mubr.msk.bf16.mxu1 %vm5558_vm0, %v5557_v38  ;;  %4658 = vmatpush3.bf16.msra.mxu1 %v5337_v7 }
 0x322   :  { %4659 = vmatprep.subr.bf16.mxu1 %v5557_v38 }
 0x325   :  { %4660 = vmatpush3.bf16.msra.mxu1 %v5338_v8 }
 0x326   :  { %4661 = vmatprep.subr.bf16.mxu1 %v5557_v38 }
 0x329   :  { %4662 = vmatpush3.bf16.msra.mxu1 %v5339_v9 }
 0x32a   :  { %4663 = vmatprep.subr.bf16.mxu1 %v5557_v38 }
 0x32d   :  { %4664 = vmatpush3.bf16.msra.mxu1 %v5340_v13 }
 0x32e   :  { %4665 = vmatprep.subr.bf16.mxu1 %v5557_v38 }
 0x331   :  { %4666 = vmatpush3.bf16.msra.mxu1 %v5341_v14 }
 0x332   :  { %4667 = vmatprep.subr.bf16.mxu1 %v5557_v38 }
 0x335   :  { %4668 = vmatpush3.bf16.msra.mxu1 %v5342_v15 }
 0x336   :  { %4669 = vmatprep.subr.bf16.mxu1 %v5557_v38 }
 0x339   :  { %4670 = vmatpush3.bf16.msra.mxu1 %v5343_v22 }
 0x33a   :  { %4671 = vmatprep.subr.bf16.mxu1 %v5557_v38 }
 0x33d   :  { %4672 = vmatpush3.bf16.msra.mxu1 %v5344_v24 }
 0x360   :  { %v3628_v16 = vpop.f32.mrf.mxu0 }
 0x361   :  { %v3629_v30 = vadd.f32 %v3628_v16, %v3070_v28 }
 0x362   :  { %v3630_v17 = vpop.f32.mrf.mxu0 }
 0x363   :  { %v3631_v32 = vadd.f32 %v3630_v17, %v3074_v29 }
 0x364   :  { %v3632_v51 = vpop.f32.mrf.mxu0 }
 0x366   :  { %v3633_v23 = vpop.f32.mrf.mxu0 }
 0x380   :  { %v4558_v1 = vpop.f32.mrf.mxu0 }
 0x382   :  { %v4559_v25 = vpop.f32.mrf.mxu0 }
 0x383   :  { %v4560_v26 = vadd.f32 %v4559_v25, %v4558_v1 }
 0x384   :  { %v4561_v33 = vpop.f32.mrf.mxu0 }
 0x385   :  { %v3711_v62 = vadd.f32 %v4560_v26, %v3078_v11 }
 0x386   :  { %v4562_v53 = vpop.f32.mrf.mxu0 }
 0x3c0   :  { %v3669_v31 = vpop.f32.mrf.mxu1 }
 0x3c1   :  { %v3670_v38 = vadd.f32 %v3669_v31, %v3629_v30 }
 0x3c2   :  { %v3671_v35 = vpop.f32.mrf.mxu1 }
 0x3c3   :  { %v3672_v37 = vadd.f32 %v3671_v35, %v3631_v32  ;;  %v3756_v36 = vmax.f32 %v3670_v38, 0.0 }
 0x3c4   :  { %v3673_v61 = vpop.f32.mrf.mxu1 }
 0x3c5   :  { %v3757_v10 = vmax.f32 %v3672_v37, 0.0  ;;  %v3759_v39 = vpack.c.bf16 %v3756_v36, %v3756_v36 }
 0x3c6   :  { %v3674_v21 = vpop.f32.mrf.mxu1 }
 0x3c7   :  { %v3760_v34 = vpack.c.bf16 %v3757_v10, %v3757_v10 }
 0x3c9   :  { %3993 = vmatprep.mubr.bf16.mxu0 %v3760_v34 }
 0x3ca   :  { %3994 = vmatmul.mubr.bf16.vlgmr.msra.gmra.mxu0 %v3759_v39 }
 0x3e0   :  { %v4580_v40 = vpop.f32.mrf.mxu1 }
 0x3e2   :  { %v4581_v18 = vpop.f32.mrf.mxu1 }
 0x3e3   :  { %v4582_v20 = vadd.f32 %v4581_v18, %v4580_v40 }
 0x3e4   :  { %v4583_v41 = vpop.f32.mrf.mxu1 }
 0x3e5   :  { %v3751_v42 = vadd.f32 %v4582_v20, %v3711_v62 }
 0x3e6   :  { %v4584_v48 = vpop.f32.mrf.mxu1 }
 0x3e7   :  { %v3758_v49 = vmax.f32 %v3751_v42, 0.0 }
 0x3e9   :  { %v3761_v12 = vpack.c.bf16 %v3758_v49, %v3758_v49 }
 0x3eb   :  { %4674 = vmatmul.mubr.bf16.vlgmr.msra.gmra.mxu1 %v3761_v12 }
 0x48a   :  { %v4602_v50 = vpop.f32.mrf.mxu0 }
 0x48c   :  { %v4603_v54 = vpop.f32.mrf.mxu0 }
 0x48d   :  { %v4604_v56 = vadd.f32 %v4603_v54, %v4602_v50 }
 0x48e   :  { %v4605_v52 = vpop.f32.mrf.mxu0 }
 0x48f   :  { %v3996_v19 = vadd.f32 %v4604_v56, %v4498_v57 }
 0x490   :  { %v4606_v55 = vpop.f32.mrf.mxu0 }
 0x4ab   :  { %v4035_v43 = vpop.f32.mrf.mxu1 }
 0x4ac   :  { %v4036_v44 = vadd.f32 %v4035_v43, %v3996_v19 }
 0x4ad   :  { %v4675_v45 = vpop.f32.mrf.mxu1 }
 0x4ae   :  { %5345 = vtanh.f32 %v4036_v44 }
 0x4af   :  { %v4038_v46 = vpop.f32.mrf.mxu1 }
 0x4b1   :  { %v4676_v58 = vpop.f32.mrf.mxu1 }
 0x4bb   :  { %v5346_v0 = vpop.eup %5345 }
 0x4bc   :  { %v4042_v59 = vmul.f32 0.05, %v5346_v0 }
 0x4be   :  { %v4043_v63 = vadd.f32 %v5347_v60, %v4042_v59 }
 0x4c0   :  { %v4523_v2 = vclamps-f32 %v4043_v63, 1.0 }
 0x4c2   :  { %4046 = vst [vmem:[#allocation16] sm:$0xff] %v4523_v2 }
 0x4c3   :  { %5519 = shalt.err (!%p5516_p2)
}
 0x4c4   :  { %4056 = dma.vmem_to_hbm [thread:$0]  %s4054_s21, 128, %s5821_s11, [#allocation4]  }
 0x4c5   :  { %5538 = dma.done.wait [#allocation4], 128  }
 0x4c6   :  { %5539 = vsyncadd [#allocation4], 4294967168 }
 0x4c7   :  { %4060 = vsyncpa [#allocation3], 1 }
 0x4c8   :  { %4061 = vsyncpa [#allocation6], 1 }
 0x4c9   :  { %4062 = vsyncpa [#allocation9], 1 }
 0x4ca   :  { %4063 = vsyncpa [#allocation12], 1 }
 0x4cb   :  { %4064 = vsyncpa [#allocation15], 1 }
 0x4cc   :  { %4065 = vsyncpa [#allocation4], 1 }

</bundles_post_ra>
